<compile_context>
chip_gen: v6e
topology: v6e:2x2x1
jax: 0.10.0
libtpu: 0.0.40
codegen_flags: <defaults>
</compile_context>

<pallas_src>
import math

import jax
import jax.numpy as jnp
from jax import lax
from jax.experimental import pallas as pl
from jax.experimental.pallas import tpu as pltpu


def gmm_w_kernel(x_ref, a_ref, c_ref, w_ref):
    """One tile of tn points vs all K clusters via a single fused MXU matmul.

    x_ref : (D, tn)      centered points, D on sublanes (layout-friendly).
    a_ref : (D*D+D, K)   packed [-0.5*P (D*D, K) ; P@mu (D, K)].
    c_ref : (1, K)       log Pi - 0.5 logdet - D/2 log(2pi) - 0.5 mu^T P mu.
    w_ref : (tn, K)      responsibilities = row softmax of logp.
    """
    D = x_ref.shape[0]
    xc = x_ref[...]                                     # (D, tn) f32, centered

    # Sublane-major feature build: every piece is a whole-(D, tn)-vreg block,
    # so the concat stacks full vregs along sublanes (no lane-misaligned XLU
    # shuffles contending with vmatmul for the vector-extended issue slots).
    # xc[i:i+1, :] is a sublane extract + sublane broadcast (cheap), not the
    # old single-lane extract + 8-lane broadcast.
    pieces = [xc * xc[i:i + 1, :] for i in range(D)]    # D pieces of (D, tn)
    pieces.append(xc)                                   # (D, tn)
    featT = jnp.concatenate(pieces, axis=0)             # (D*D + D, tn)

    # Single MXU matmul contracting the sublane axis of both operands
    # (featT^T @ A) -> output lands directly in the lane-dense (tn, K)
    # orientation of w_ref. f32 accumulation regardless of operand dtype.
    logp = lax.dot_general(
        featT.astype(a_ref.dtype), a_ref[...],
        dimension_numbers=(((0,), (0,)), ((), ())),
        preferred_element_type=jnp.float32)             # (tn, K)
    logp = logp + c_ref[...]                            # per-cluster constant

    # Row softmax over clusters (LSE-stabilized). Only the (tn, 1) denominator
    # hits the reciprocal; the large (tn, K) op is a broadcast multiply.
    m = jnp.max(logp, axis=-1, keepdims=True)
    e = jnp.exp(logp - m)
    s = jnp.sum(e, axis=-1, keepdims=True)
    inv = pl.reciprocal(s, approx=True)                 # EUP slot, ~2^-12
    inv = inv * (2.0 - s * inv)                         # 1 Newton step -> ~exact
    w_ref[...] = (e * inv).astype(w_ref.dtype)


def _pick_tn(N):
    """Row-tile size: big tiles amortize the ~0.35us/step overhead, but keep
    the grid >= 2 steps so v7x megacore can shard rows over both TensorCores.
    At tn=2048 the working set is only ~7-8 MiB, under every generation's
    scoped-VMEM default (incl. v5e's 16 MiB), so no vmem_limit override needed."""
    tn_max = 2048
    if N >= 2 * tn_max:
        return tn_max
    half = pl.cdiv(N, 2)
    return max(256, min(tn_max, pl.cdiv(half, 256) * 256))


def gmm_update_w(x, mu, var, Pi, *, tn=None,
                 out_dtype=jnp.float32, matmul_dtype=jnp.float32):
    """Pallas wrapper: returns W of shape (N, K).

    out_dtype / matmul_dtype are opt-in bf16 levers (change numerics ~2^-8);
    defaults keep full f32 so the 5e-4 reference tolerances hold.
    """
    N, D = x.shape
    K = mu.shape[0]
    if tn is None:
        tn = _pick_tn(N)

    f32 = jnp.float32
    x = x.astype(f32)
    mu = mu.astype(f32)
    var = var.astype(f32)
    Pi = Pi.astype(f32)

    # Shared shift (distribution-invariant): improves f32 cancellation of the
    # expanded quadratic form for uncentered data. Fused into the (D-wide,
    # cheap) transpose pass over x — no extra HBM pass.
    shift = jnp.mean(mu, axis=0)                                       # (D,)
    mu_c = mu - shift[None, :]
    xT = jnp.transpose(x - shift[None, :])                             # (D, N)

    # Per-cluster precomputation (parameter-sized glue).
    # TODO(synk): near-singular covariances would need diagonal jitter / pinv
    # fallback; the reference module assumes SPD var.
    chol = jnp.linalg.cholesky(var)                                    # (K,D,D)
    eye = jnp.eye(D, dtype=f32)
    P = jax.vmap(lambda c_: jax.scipy.linalg.cho_solve((c_, True), eye))(chol)
    logdet = 2.0 * jnp.sum(
        jnp.log(jnp.diagonal(chol, axis1=-2, axis2=-1)), axis=-1)      # (K,)
    b = jnp.einsum('kij,kj->ki', P, mu_c)                              # (K, D)
    quad_mu = jnp.sum(mu_c * b, axis=-1)                               # (K,)
    c = (jnp.log(Pi) - 0.5 * logdet
         - 0.5 * D * math.log(2.0 * math.pi) - 0.5 * quad_mu)          # (K,)

    F = D * D + D
    a_pack = jnp.concatenate(
        [(-0.5 * P).reshape(K, D * D).T,     # rows i*D+j  <->  feat x_i * x_j
         b.T],                               # rows D*D+j  <->  feat x_j
        axis=0).astype(matmul_dtype)                                   # (F, K)
    c2d = c.reshape(1, K).astype(f32)                                  # (1, K)

    grid = (pl.cdiv(N, tn),)                 # ragged tail handled by Pallas
    W = pl.pallas_call(
        gmm_w_kernel,
        out_shape=jax.ShapeDtypeStruct((N, K), out_dtype),
        grid_spec=pltpu.PrefetchScalarGridSpec(
            num_scalar_prefetch=0,
            grid=grid,
            in_specs=[
                pl.BlockSpec((D, tn), lambda n: (0, n)),
                pl.BlockSpec((F, K), lambda n: (0, 0)),   # constant operand
                pl.BlockSpec((1, K), lambda n: (0, 0)),   # constant bias
            ],
            out_specs=pl.BlockSpec((tn, K), lambda n: (n, 0)),
        ),
        compiler_params=pltpu.CompilerParams(
            dimension_semantics=("parallel",)),
    )(xT, a_pack, c2d)
    return W


def gmm_update_w_ref(x, mu, var, Pi):
    """Pure-JAX reference (exactly the MultivariateNormal-pdf formulation)."""
    diff = x[:, None, :] - mu[None, :, :]                       # (N, K, D)
    P = jnp.linalg.inv(var)
    quad = jnp.einsum('nkd,kde,nke->nk', diff, P, diff)
    _, logdet = jnp.linalg.slogdet(var)
    logp = (jnp.log(Pi)[None, :]
            - 0.5 * (logdet[None, :] + x.shape[1] * math.log(2.0 * math.pi) + quad))
    return jax.nn.softmax(logp, axis=-1)


if __name__ == "__main__":
    # Small shapes consistent with the module: ncluster=K, ndim=D, N points.
    # N deliberately not a multiple of the row tile to exercise the ragged
    # tail path; _pick_tn keeps the grid at >= 2 steps for v7x megacore.
    N, K, D = 1000, 128, 8

    key = jax.random.PRNGKey(0)
    kx, kmu, kvar = jax.random.split(key, 3)

    x = jax.random.normal(kx, (N, D), dtype=jnp.float32)
    mu = jax.random.normal(kmu, (K, D), dtype=jnp.float32)             # (ncluster, ndim)
    A = jax.random.normal(kvar, (K, D, D), dtype=jnp.float32) * 0.3
    var = (jnp.einsum('kij,klj->kil', A, A)                            # SPD covariances
           + 0.5 * jnp.eye(D, dtype=jnp.float32)[None, :, :])          # (ncluster, ndim, ndim)
    Pi = jnp.ones((K,), dtype=jnp.float32) / K                         # uniform mixture weights

    W = jax.block_until_ready(gmm_update_w(x, mu, var, Pi))

    W_ref = gmm_update_w_ref(x, mu, var, Pi)
    assert W.shape == (N, K) and W.dtype == jnp.float32
    assert jnp.allclose(jnp.sum(W, axis=-1), 1.0, atol=5e-4)
    assert jnp.allclose(W, W_ref, atol=5e-4, rtol=5e-4)

    print("KERNEL_OK")
</pallas_src>

<mosaic_0001>
module attributes {stable_mosaic.version = 11 : i64} {
  func.func @gmm_w_kernel(%arg0: i32, %arg1: memref<8x512xf32, #tpu.memory_space<vmem>>, %arg2: memref<72x128xf32, #tpu.memory_space<vmem>>, %arg3: memref<1x128xf32, #tpu.memory_space<vmem>>, %arg4: memref<512x128xf32, #tpu.memory_space<vmem>>) attributes {dimension_semantics = [#tpu.dimension_semantics<parallel>], iteration_bounds = array<i64: 2>, scalar_prefetch = 0 : i64, scratch_operands = 0 : i64, tpu.core_type = #tpu.core_type<tc>, window_params = [{transform_indices = @transform_0, window_bounds = array<i64: 8, 512>}, {pipeline_mode = #tpu.pipeline_mode<synchronous>, transform_indices = @transform_1, window_bounds = array<i64: 72, 128>}, {pipeline_mode = #tpu.pipeline_mode<synchronous>, transform_indices = @transform_2, window_bounds = array<i64: 1, 128>}, {transform_indices = @transform_3, window_bounds = array<i64: 512, 128>}]} {
    %c0 = arith.constant 0 : index
    %c0_0 = arith.constant 0 : index
    %0 = vector.load %arg1[%c0, %c0_0] : memref<8x512xf32, #tpu.memory_space<vmem>>, vector<8x512xf32>
    %1 = vector.extract_strided_slice %0 {offsets = [0, 0], sizes = [1, 512], strides = [1, 1]} : vector<8x512xf32> to vector<1x512xf32>
    %2 = vector.broadcast %1 : vector<1x512xf32> to vector<8x512xf32>
    %3 = arith.mulf %0, %2 : vector<8x512xf32>
    %4 = vector.extract_strided_slice %0 {offsets = [1, 0], sizes = [1, 512], strides = [1, 1]} : vector<8x512xf32> to vector<1x512xf32>
    %5 = vector.broadcast %4 : vector<1x512xf32> to vector<8x512xf32>
    %6 = arith.mulf %0, %5 : vector<8x512xf32>
    %7 = vector.extract_strided_slice %0 {offsets = [2, 0], sizes = [1, 512], strides = [1, 1]} : vector<8x512xf32> to vector<1x512xf32>
    %8 = vector.broadcast %7 : vector<1x512xf32> to vector<8x512xf32>
    %9 = arith.mulf %0, %8 : vector<8x512xf32>
    %10 = vector.extract_strided_slice %0 {offsets = [3, 0], sizes = [1, 512], strides = [1, 1]} : vector<8x512xf32> to vector<1x512xf32>
    %11 = vector.broadcast %10 : vector<1x512xf32> to vector<8x512xf32>
    %12 = arith.mulf %0, %11 : vector<8x512xf32>
    %13 = vector.extract_strided_slice %0 {offsets = [4, 0], sizes = [1, 512], strides = [1, 1]} : vector<8x512xf32> to vector<1x512xf32>
    %14 = vector.broadcast %13 : vector<1x512xf32> to vector<8x512xf32>
    %15 = arith.mulf %0, %14 : vector<8x512xf32>
    %16 = vector.extract_strided_slice %0 {offsets = [5, 0], sizes = [1, 512], strides = [1, 1]} : vector<8x512xf32> to vector<1x512xf32>
    %17 = vector.broadcast %16 : vector<1x512xf32> to vector<8x512xf32>
    %18 = arith.mulf %0, %17 : vector<8x512xf32>
    %19 = vector.extract_strided_slice %0 {offsets = [6, 0], sizes = [1, 512], strides = [1, 1]} : vector<8x512xf32> to vector<1x512xf32>
    %20 = vector.broadcast %19 : vector<1x512xf32> to vector<8x512xf32>
    %21 = arith.mulf %0, %20 : vector<8x512xf32>
    %22 = vector.extract_strided_slice %0 {offsets = [7, 0], sizes = [1, 512], strides = [1, 1]} : vector<8x512xf32> to vector<1x512xf32>
    %23 = vector.broadcast %22 : vector<1x512xf32> to vector<8x512xf32>
    %24 = arith.mulf %0, %23 : vector<8x512xf32>
    %25 = tpu.concatenate %3, %6, %9, %12, %15, %18, %21, %24, %0 in 0 : vector<8x512xf32>, vector<8x512xf32>, vector<8x512xf32>, vector<8x512xf32>, vector<8x512xf32>, vector<8x512xf32>, vector<8x512xf32>, vector<8x512xf32>, vector<8x512xf32> -> vector<72x512xf32>
    %c0_1 = arith.constant 0 : index
    %c0_2 = arith.constant 0 : index
    %26 = vector.load %arg2[%c0_1, %c0_2] : memref<72x128xf32, #tpu.memory_space<vmem>>, vector<72x128xf32>
    %cst = arith.constant dense<0.000000e+00> : vector<512x128xf32>
    %27 = tpu.matmul %25, %26, %cst {dimension_numbers = #tpu.dot_dimension_numbers<[0], [0], [1], [1], [0, 1, 1, 1], [], []>} : vector<72x512xf32>, vector<72x128xf32>, vector<512x128xf32> -> vector<512x128xf32>
    %c0_3 = arith.constant 0 : index
    %c0_4 = arith.constant 0 : index
    %28 = vector.load %arg3[%c0_3, %c0_4] : memref<1x128xf32, #tpu.memory_space<vmem>>, vector<1x128xf32>
    %29 = vector.broadcast %28 : vector<1x128xf32> to vector<512x128xf32>
    %30 = arith.addf %27, %29 : vector<512x128xf32>
    %cst_5 = arith.constant dense<0xFF800000> : vector<512xf32>
    %31 = vector.multi_reduction <maximumf>, %30, %cst_5 [1] : vector<512x128xf32> to vector<512xf32>
    %32 = vector.shape_cast %31 : vector<512xf32> to vector<512x1xf32>
    %33 = vector.broadcast %32 : vector<512x1xf32> to vector<512x128xf32>
    %34 = arith.subf %30, %33 : vector<512x128xf32>
    %35 = math.exp %34 : vector<512x128xf32>
    %cst_6 = arith.constant dense<0.000000e+00> : vector<512xf32>
    %36 = vector.multi_reduction <add>, %35, %cst_6 [1] : vector<512x128xf32> to vector<512xf32>
    %37 = vector.shape_cast %36 : vector<512xf32> to vector<512x1xf32>
    %38 = tpu.reciprocal %37 {approx = true} : vector<512x1xf32> -> vector<512x1xf32>
    %39 = arith.mulf %37, %38 : vector<512x1xf32>
    %cst_7 = arith.constant 2.000000e+00 : f32
    %40 = vector.broadcast %cst_7 : f32 to vector<512x1xf32>
    %41 = arith.subf %40, %39 : vector<512x1xf32>
    %42 = arith.mulf %38, %41 : vector<512x1xf32>
    %43 = vector.broadcast %42 : vector<512x1xf32> to vector<512x128xf32>
    %44 = arith.mulf %35, %43 : vector<512x128xf32>
    %c0_8 = arith.constant 0 : index
    %c0_9 = arith.constant 0 : index
    %45 = vector.load %arg4[%c0_8, %c0_9] : memref<512x128xf32, #tpu.memory_space<vmem>>, vector<512x128xf32>
    tpu.vector_store %arg4[%c0_8, %c0_9], %44 {strides = array<i32>} : memref<512x128xf32, #tpu.memory_space<vmem>>, vector<512x128xf32>,
    return
  }
  func.func @transform_0(%arg0: i32) -> (i32, i32) {
    %c0_i32 = arith.constant 0 : i32
    %c0_i32_0 = arith.constant 0 : i32
    return %c0_i32, %arg0 : i32, i32
  }
  func.func @transform_1(%arg0: i32) -> (i32, i32) {
    %c0_i32 = arith.constant 0 : i32
    %c0_i32_0 = arith.constant 0 : i32
    %c0_i32_1 = arith.constant 0 : i32
    return %c0_i32, %c0_i32_0 : i32, i32
  }
  func.func @transform_2(%arg0: i32) -> (i32, i32) {
    %c0_i32 = arith.constant 0 : i32
    %c0_i32_0 = arith.constant 0 : i32
    %c0_i32_1 = arith.constant 0 : i32
    return %c0_i32, %c0_i32_0 : i32, i32
  }
  func.func @transform_3(%arg0: i32) -> (i32, i32) {
    %c0_i32 = arith.constant 0 : i32
    %c0_i32_0 = arith.constant 0 : i32
    return %arg0, %c0_i32 : i32, i32
  }
}

</mosaic_0001>

<bundles_post_ra>
// kernel: tpu_custom_call.1
= control target key start
LH: loop header
LB: loop body
LE: loop exit
PB: predicated region body
PF: predicated region fallthrough
CT: control target
= control target key end

     0   :  { %8 = vsyncpa [#allocation3], 0  ;;  %s3792_s0 = inlined_call_operand.hbm [shape: f32[8,1000], index: 0, kind: input, shape index: {}]   ;;  %s3793_s1 = inlined_call_operand.hbm [shape: f32[72,128], index: 1, kind: input, shape index: {}]   ;;  %s3794_s2 = inlined_call_operand.vmem [shape: f32[1,128], index: 2, kind: input, shape index: {}]   ;;  %s3795_s3 = inlined_call_operand.hbm [shape: f32[1000,128], index: 3, kind: output, shape index: {}]  }
   0x1   :  { %10 = vsyncpa [#allocation3 + $0x1], 0 }
   0x2   :  { %11 = vsyncpa [#allocation6], 0 }
   0x3   :  { %12 = vsyncpa [#allocation4], 0 }
   0x4   :  { %14 = vsyncpa [#allocation4 + $0x1], 0  ;;  %s2789_s12 = smov 0   ;;  %s2791_s13 = smov 0  }
   0x5   :  { %s2793_s14 = smov 0   ;;  %s2795_s15 = smov 0  }
   0x6 LB: > { %s2810_s16 = sadd.s32 4294967295, %s2760_s15   ;;  %s2029_s17 = sadd.s32 4294967294, %s2760_s15   ;;  %s2760_s15 = sphi %s2795_s15, %s3930_s15   ;;  %s2756_s14 = sphi %s2793_s14, %s3929_s14   ;;  %s2752_s13 = sphi %s2791_s13, %s3928_s13   ;;  %s2748_s12 = sphi %s2789_s12, %s3927_s12  }
   0x7   : > { %p40_p0 = scmp.ne.s32.totalorder %s2752_s13, %s2748_s12  ;;  %p3796_p1 = scmp.eq.s32.totalorder %s2810_s16, 0 }
   0x8   : > { %p112_p3 = scmp.eq.s32.totalorder %s2029_s17, 1  ;;  %p2030_p5 = scmp.ge.s32.totalorder %s2760_s15, 1 }
   0x9   : > { %p2819_p4 = por %p3796_p1, %p40_p0  ;;  %p119_p7 = scmp.lt.s32.totalorder %s2760_s15, 3 }
   0xa   : > { %p2824_p6 = por %p112_p3, %p40_p0  ;;  %s2762_s21 = smov [#allocation5]  }
   0xb   : > { %s3837_s18 = scalar_select %p2819_p4, 1, 0 }
   0xc   : > { %s3838_s19 = scalar_select %p2824_p6, 1, 0 }
   0xd   : > { %p2829_p8 = pnand %p2030_p5, %p119_p7  ;;  %s131_s22 = sshll.u32 %s2762_s21, 4  ;;  %s132_s22 = int_to_ptr.vmem [resolvable:$true] %s131_s22 }
   0xe   : > { %s2843_s24 = sadd.s32 1, %s2760_s15   ;;  %s27_s25 = sadd.s32 1, %s2756_s14 }
   0xf   : > { %s3839_s20 = scalar_select %p2829_p8, 1, 0 }
  0x10   : > { %p2328_p9 = pneg %p2829_p8  ;;  %s24_s26 = ssub.s32 %s2760_s15, %s2843_s24 }
  0x11   : > { %s2649_s27 = scalar_lea.vmem %s132_s22, 1152  ;;  %p2657_p5 = scmp.lt.s32.totalorder %s132_s22, %s132_s22 }
  0x12   : > { %p2838_p11 = pnand %p2328_p9, %p3796_p1  ;;  %p2650_p13 = scmp.ne.s32.totalorder %s132_s22, %s2649_s27 }
  0x13   : > { %p2658_p7 = scmp.lt.s32.totalorder %s2649_s27, %s2649_s27 }
  0x14   : > { %p2640_p12 = pneg %p2838_p11 }
  0x15   : > { %p2659_p10 = por %p2658_p7, %p2657_p5 }
  0x16   : > { %p2652_p0 = pnand %p2650_p13, %p2640_p12 }
  0x18   : > { %p2653_p3 = pneg %p2652_p0 }
  0x1a   : > { %p2660_p2 = pnand %p2659_p10, %p2653_p3 }
  0x1c   : > { %2663 = shalt.err (!%p2660_p2)
}
  0x1d   : > { %s2763_s28 = smov 128   ;;  %s2764_s29 = smov 8  }
  0x1e   : > { %2331 = dma.hbm_to_vmem [thread:$0]  (!%p2838_p11), %s3793_s1, 1152, %s132_s22, [#allocation6], %s2763_s28, %s2763_s28, %s2764_s29  }
  0x1f   : > { %p25_p9 = scmp.eq.s32.totalorder %s24_s26, 0  ;;  %p34_p12 = scmp.ne.s32.totalorder %s2756_s14, %s2752_s13 }
  0x20   : > { %p35_p10 = scmp.eq.s32.totalorder %s2760_s15, 0  ;;  %p2341_p2 = scmp.lt.s32.totalorder %s2760_s15, 2 }
  0x21   : > { %s2860_s5 = scalar_select %p25_p9, %s2756_s14, %s27_s25  }
  0x22   : > { %p36_p13 = por %p35_p10, %p34_p12  ;;  %p3841_p0 = scmp.eq.s32.totalorder %s2810_s16, 1 }
  0x23   : > { %s148_s7 = sand.u32 1, %s2756_s14   ;;  %s2114_s8 = sshll.u32 %s2760_s15, 9 }
  0x24   : > { %p2864_p3 = por %p3841_p0, %p34_p12  ;;  %s2033_s9 = sshll.u32 %s148_s7, 5 }
  0x25   : > { %s2873_s17 = scalar_lea.hbm %s3792_s0, %s2114_s8  ;;  %s152_s21 = scalar_lea.vmem [#allocation2], %s2033_s9 }
  0x26   : > { %s3842_s6 = scalar_select %p2864_p3, 1, 0 }
  0x27   : > { %s160_s22 = sshll.u32 %s152_s21, 4  ;;  %p2875_p11 = pnand %p2341_p2, %p36_p13  ;;  %s161_s22 = int_to_ptr.vmem [resolvable:$true] %s160_s22 }
  0x28   : > { %s149_s25 = scalar_lea.sflag [#allocation3], %s148_s7  ;;  %s2664_s26 = scalar_lea.hbm %s2873_s17, 512 }
  0x29   : > { %p2665_p5 = scmp.ne.s32.totalorder %s2873_s17, %s2664_s26  ;;  %p2666_p7 = pneg %p2875_p11 }
  0x2a   : > { %s2669_s29 = scalar_lea.hbm %s3792_s0, 1024  ;;  %p2670_p10 = scmp.lt.s32.totalorder %s2873_s17, %s3792_s0 }
  0x2b   : > { %p2667_p9 = pnand %p2666_p7, %p2665_p5  ;;  %p2671_p2 = scmp.lt.s32.totalorder %s2669_s29, %s2664_s26 }
  0x2d   : > { %p2668_p12 = pneg %p2667_p9  ;;  %p2672_p13 = por %p2671_p2, %p2670_p10 }
  0x2f   : > { %p2673_p0 = pnand %p2672_p13, %p2668_p12 }
  0x31   : > { %2676 = shalt.err (!%p2673_p0)
}
  0x32   : > { %s2677_s8 = scalar_lea.vmem %s161_s22, 512  ;;  %s2765_s7 = smov [#allocation2]  }
  0x33   : > { %p2678_p1 = scmp.ne.s32.totalorder %s161_s22, %s2677_s8  ;;  %s2682_s9 = sshll.u32 %s2765_s7, 4  ;;  %s2683_s9 = int_to_ptr.vmem [resolvable:$false] %s2682_s9 }
  0x34   : > { %s2684_s10 = scalar_lea.vmem %s2683_s9, 1024  ;;  %p2685_p5 = scmp.lt.s32.totalorder %s161_s22, %s2683_s9 }
  0x35   : > { %p2680_p6 = pnand %p2678_p1, %p2666_p7  ;;  %p2686_p9 = scmp.lt.s32.totalorder %s2684_s10, %s2677_s8 }
  0x37   : > { %p2681_p3 = pneg %p2680_p6  ;;  %p2687_p4 = por %p2686_p9, %p2685_p5 }
  0x39   : > { %p2688_p8 = pnand %p2687_p4, %p2681_p3 }
  0x3b   : > { %2691 = shalt.err (!%p2688_p8)
}
  0x3c   : > { %2335 = dma.hbm_to_vmem [thread:$0]  (!%p2875_p11), %s2873_s17, 512, %s161_s22, %s149_s25  }
  0x3d   : > { %p3844_p12 = scmp.ne.s32.totalorder %s3839_s20, 0 }
  0x3f   : > { %169 = sbr.rel (%p3844_p12) target bundleno = 886 (0x376), region = 32 }
  0x44   : > { %s2896_s11 = sand.u32 1, %s2752_s13   ;;  %p3845_p1 = scmp.ne.s32.totalorder %s3837_s18, 0 }
  0x45   : > { %s2037_s21 = sshll.u32 %s2896_s11, 5  ;;  %s172_s26 = scalar_lea.sflag [#allocation3], %s2896_s11 }
  0x46   : > { %s2900_s27 = scalar_lea.vmem [#allocation2], %s2037_s21 }
  0x47   : > { %2735 = dma.done.wait (%p3845_p1), %s172_s26, 512  }
  0x48   : > { %2737 = vsyncadd (%p3845_p1), %s172_s26, 4294966784  ;;  %p3846_p4 = scmp.eq.s32.totalorder %s2810_s16, 0 }
  0x4a   : > { %2739 = dma.done.wait (%p3846_p4), [#allocation6], 1152   ;;  %p3847_p6 = pmov %p3846_p4 }
  0x4b   : > { %v212_v0 = vlaneseq  ;;  %v2919_v4 = vld [vmem:[%s2900_s27 + $0x10] sm:$0xff]  ;;  %v2922_v5 = vld [vmem:[%s2900_s27] sm:$0xff]  ;;  %v379_v14 = vld [vmem:[#allocation5 + $0x38] sm:$0xff]  ;;  %vm516_vm0 = vcmask 588800   ;;  %s2039_s17 = sshll.u32 %s2896_s11, 9  ;;  %s1927_s23 = scalar_lea.sflag [#allocation4], %s2896_s11 }
  0x4c   : > { %2741 = vsyncadd (%p3847_p6), [#allocation6], 4294966144  ;;  %v380_v11 = vld [vmem:[#allocation5 + $0x40] sm:$0xff]  ;;  %v378_v21 = vld [vmem:[#allocation5 + $0x30] sm:$0xff]  ;;  %s3593_s22 = scalar_lea.vmem [#allocation7], %s2039_s17  ;;  %p3924_p8 = scmp.ne.s32.totalorder %s3842_s6, 0 }
  0x4d   : > { %v2910_v1 = vshrl.u32 %v212_v0, 7  ;;  %2189 = vmatprep.subr.mxu0 %v380_v11  ;;  %2303 = vmatprep.subr.mxu1 %v380_v11  ;;  %v377_v31 = vld [vmem:[#allocation5 + $0x28] sm:$0xff]  ;;  %v376_v34 = vld [vmem:[#allocation5 + $0x20] sm:$0xff]  ;;  %v375_v38 = vld [vmem:[#allocation5 + $0x18] sm:$0xff]  ;;  %s2106_s25 = sshll.u32 (%p3924_p8), %s2810_s16, 6 }
  0x4e   : > { %2190 = vmatpush3.msra.mxu0 %v380_v11  ;;  %2312 = vmatpush3.msra.mxu1 %v380_v11  ;;  %v374_v44 = vld [vmem:[#allocation5 + $0x10] sm:$0xff]  ;;  %v373_v46 = vld [vmem:[#allocation5 + $0x8] sm:$0xff]  ;;  %v372_v50 = vld [vmem:[#allocation5] sm:$0xff]  ;;  %s1935_s28 = ssub.s32 (%p3924_p8), 125, %s2106_s25 }
  0x4f   : > { %v2913_v2 = vsub.s32 0, %v2910_v1  ;;  %v2916_v3 = vsub.s32 1, %v2910_v1  ;;  %v2925_v6 = vsub.s32 2, %v2910_v1  ;;  %v2940_v16 = vsub.s32 3, %v2910_v1  ;;  %2191 = vmatprep.subr.mxu0 %v379_v14  ;;  %2304 = vmatprep.subr.mxu1 %v379_v14  ;;  %v209_v53 = vld [vmem:[%s2900_s27 + $0x8] sm:$0xff]  ;;  %v211_v54 = vld [vmem:[%s2900_s27 + $0x18] sm:$0xff] }
  0x50   : > { %2192 = vmatpush3.msra.mxu0 %v379_v14  ;;  %v2953_v25 = vsub.s32 4, %v2910_v1  ;;  %v2957_v27 = vsub.s32 5, %v2910_v1  ;;  %2313 = vmatpush3.msra.mxu1 %v379_v14  ;;  %v2967_v33 = vsub.s32 6, %v2910_v1  ;;  %v2976_v40 = vsub.s32 7, %v2910_v1  ;;  %p1936_p3 = scmp.lt.s32.totalorder (%p3924_p8), %s1935_s28, 64 }
  0x51   : > { %v223_v7 = vrot.slane %v2919_v4, %v2913_v2  ;;  %v215_v8 = vrot.slane %v2922_v5, %v2913_v2  ;;  %v243_v9 = vrot.slane %v2919_v4, %v2916_v3  ;;  %v235_v10 = vrot.slane %v2922_v5, %v2916_v3  ;;  %2193 = vmatprep.subr.mxu0 %v378_v21 }
  0x52   : > { %v263_v15 = vrot.slane %v2919_v4, %v2925_v6  ;;  %v255_v19 = vrot.slane %v2922_v5, %v2925_v6  ;;  %v283_v20 = vrot.slane %v2919_v4, %v2940_v16  ;;  %v275_v24 = vrot.slane %v2922_v5, %v2940_v16  ;;  %2194 = vmatpush3.msra.mxu0 %v378_v21 }
  0x53   : > { %v230_v12 = vmul.f32 %v223_v7, %v2919_v4  ;;  %v228_v13 = vmul.f32 %v215_v8, %v2922_v5  ;;  %v250_v17 = vmul.f32 %v243_v9, %v2919_v4  ;;  %v248_v18 = vmul.f32 %v235_v10, %v2922_v5  ;;  %2305 = vmatprep.subr.mxu1 %v378_v21 }
  0x54   : > { %v270_v22 = vmul.f32 %v263_v15, %v2919_v4  ;;  %v268_v23 = vmul.f32 %v255_v19, %v2922_v5  ;;  %v290_v26 = vmul.f32 %v283_v20, %v2919_v4  ;;  %v288_v28 = vmul.f32 %v275_v24, %v2922_v5  ;;  %2195 = vmatprep.subr.mxu0 %v377_v31 }
  0x55   : > { %452 = vxpose.xlu1.b32.start [1/9] (short) %v230_v12, 128  ;;  %388 = vxpose.xlu0.b32.start [1/9] (short) %v228_v13, 128  ;;  %v303_v29 = vrot.slane %v2919_v4, %v2953_v25  ;;  %v295_v30 = vrot.slane %v2922_v5, %v2953_v25  ;;  %v323_v32 = vrot.slane %v2919_v4, %v2957_v27 }
  0x56   : > { %v315_v37 = vrot.slane %v2922_v5, %v2957_v27  ;;  %2314 = vmatpush3.msra.mxu1 %v378_v21  ;;  %2196 = vmatpush3.msra.mxu0 %v377_v31  ;;  %v343_v39 = vrot.slane %v2919_v4, %v2967_v33  ;;  %v335_v43 = vrot.slane %v2922_v5, %v2967_v33 }
  0x57   : > { %v310_v35 = vmul.f32 %v303_v29, %v2919_v4  ;;  %v308_v36 = vmul.f32 %v295_v30, %v2922_v5  ;;  %2306 = vmatprep.subr.mxu1 %v377_v31  ;;  %2197 = vmatprep.subr.mxu0 %v376_v34  ;;  %v330_v41 = vmul.f32 %v323_v32, %v2919_v4 }
  0x58   : > { %2315 = vmatpush3.msra.mxu1 %v377_v31  ;;  %2198 = vmatpush3.msra.mxu0 %v376_v34  ;;  %v328_v42 = vmul.f32 %v315_v37, %v2922_v5  ;;  %v363_v45 = vrot.slane %v2919_v4, %v2976_v40  ;;  %v350_v47 = vmul.f32 %v343_v39, %v2919_v4 }
  0x59   : > { %453 = vxpose.xlu1.b32.cont [2/9] (short) %v250_v17, 128  ;;  %389 = vxpose.xlu0.b32.cont [2/9] (short) %v248_v18, 128  ;;  %v348_v48 = vmul.f32 %v335_v43, %v2922_v5  ;;  %v355_v49 = vrot.slane %v2922_v5, %v2976_v40  ;;  %v219_v55 = vrot.slane %v209_v53, %v2913_v2 }
  0x5a   : > { %2307 = vmatprep.subr.mxu1 %v376_v34  ;;  %2199 = vmatprep.subr.mxu0 %v375_v38  ;;  %v370_v51 = vmul.f32 %v363_v45, %v2919_v4  ;;  %v227_v56 = vrot.slane %v211_v54, %v2913_v2  ;;  %v239_v59 = vrot.slane %v209_v53, %v2916_v3 }
  0x5b   : > { %2316 = vmatpush3.msra.mxu1 %v376_v34  ;;  %2200 = vmatpush3.msra.mxu0 %v375_v38  ;;  %v368_v52 = vmul.f32 %v355_v49, %v2922_v5  ;;  %v229_v57 = vmul.f32 %v219_v55, %v209_v53  ;;  %v247_v60 = vrot.slane %v211_v54, %v2916_v3 }
  0x5c   : > { %2308 = vmatprep.subr.mxu1 %v375_v38  ;;  %2201 = vmatprep.subr.mxu0 %v374_v44  ;;  %v231_v58 = vmul.f32 %v227_v56, %v211_v54  ;;  %v259_v61 = vrot.slane %v209_v53, %v2925_v6  ;;  %v249_v62 = vmul.f32 %v239_v59, %v209_v53 }
  0x5d   : > { %454 = vxpose.xlu1.b32.cont [3/9] (short) %v270_v22, 128  ;;  %390 = vxpose.xlu0.b32.cont [3/9] (short) %v268_v23, 128  ;;  %v251_v63 = vmul.f32 %v247_v60, %v211_v54  ;;  %v267_v0 = vrot.slane %v211_v54, %v2925_v6  ;;  %v279_v1 = vrot.slane %v209_v53, %v2940_v16 }
  0x5e   : > { %2317 = vmatpush3.msra.mxu1 %v375_v38  ;;  %2202 = vmatpush3.msra.mxu0 %v374_v44  ;;  %v299_v8 = vrot.slane %v209_v53, %v2953_v25  ;;  %v307_v9 = vrot.slane %v211_v54, %v2953_v25  ;;  %v319_v10 = vrot.slane %v209_v53, %v2957_v27 }
  0x5f   : > { %2309 = vmatprep.subr.mxu1 %v374_v44  ;;  %2203 = vmatprep.subr.mxu0 %v373_v46  ;;  %v271_v2 = vmul.f32 %v267_v0, %v211_v54  ;;  %v289_v7 = vmul.f32 %v279_v1, %v209_v53  ;;  %v327_v12 = vrot.slane %v211_v54, %v2957_v27 }
  0x60   : > { %2318 = vmatpush3.msra.mxu1 %v374_v44  ;;  %2204 = vmatpush3.msra.mxu0 %v373_v46  ;;  %v309_v6 = vmul.f32 %v299_v8, %v209_v53  ;;  %v311_v11 = vmul.f32 %v307_v9, %v211_v54  ;;  %v339_v13 = vrot.slane %v209_v53, %v2967_v33 }
  0x61   : > { %455 = vxpose.xlu1.b32.cont [4/9] (short) %v290_v26, 128  ;;  %391 = vxpose.xlu0.b32.cont [4/9] (short) %v288_v28, 128  ;;  %v329_v14 = vmul.f32 %v319_v10, %v209_v53  ;;  %v331_v15 = vmul.f32 %v327_v12, %v211_v54  ;;  %v359_v17 = vrot.slane %v209_v53, %v2976_v40 }
  0x62   : > { %2310 = vmatprep.subr.mxu1 %v373_v46  ;;  %2205 = vmatprep.subr.mxu0 %v372_v50  ;;  %v349_v18 = vmul.f32 %v339_v13, %v209_v53  ;;  %v367_v20 = vrot.slane %v211_v54, %v2976_v40 }
  0x63   : > { %2319 = vmatpush3.msra.mxu1 %v373_v46  ;;  %2206 = vmatpush3.msra.mxu0 %v372_v50  ;;  %v369_v21 = vmul.f32 %v359_v17, %v209_v53 }
  0x64   : > { %2311 = vmatprep.subr.mxu1 %v372_v50  ;;  %v371_v22 = vmul.f32 %v367_v20, %v211_v54 }
  0x65   : > { %456 = vxpose.xlu1.b32.cont [5/9] (short) %v310_v35, 128  ;;  %392 = vxpose.xlu0.b32.cont [5/9] (short) %v308_v36, 128 }
  0x66   : > { %2320 = vmatpush3.msra.mxu1 %v372_v50 }
  0x69   : > { %457 = vxpose.xlu1.b32.cont [6/9] (short) %v330_v41, 128  ;;  %393 = vxpose.xlu0.b32.cont [6/9] (short) %v328_v42, 128 }
  0x6d   : > { %458 = vxpose.xlu1.b32.cont [7/9] (short) %v350_v47, 128  ;;  %394 = vxpose.xlu0.b32.cont [7/9] (short) %v348_v48, 128 }
  0x71   : > { %459 = vxpose.xlu1.b32.cont [8/9] (short) %v370_v51, 128  ;;  %395 = vxpose.xlu0.b32.cont [8/9] (short) %v368_v52, 128 }
  0x75   : > { %460 = vxpose.xlu1.b32.end [9/9] (short) %v2919_v4, 128  ;;  %396 = vxpose.xlu0.b32.end [9/9] (short) %v2922_v5, 128  ;;  %v269_v4 = vmul.f32 %v259_v61, %v209_v53  ;;  %v287_v5 = vrot.slane %v211_v54, %v2940_v16  ;;  %v347_v16 = vrot.slane %v211_v54, %v2967_v33 }
  0x77   : > { %v291_v3 = vmul.f32 %v287_v5, %v211_v54  ;;  %v351_v19 = vmul.f32 %v347_v16, %v211_v54 }
  0x92   : > { %420 = vxpose.xlu0.b32.start [1/9] (short) %v229_v57, 128  ;;  %484 = vxpose.xlu1.b32.start [1/9] (short) %v231_v58, 128 }
  0x96   : > { %421 = vxpose.xlu0.b32.cont [2/9] (short) %v249_v62, 128  ;;  %485 = vxpose.xlu1.b32.cont [2/9] (short) %v251_v63, 128 }
  0x9a   : > { %422 = vxpose.xlu0.b32.cont [3/9] (short) %v269_v4, 128  ;;  %486 = vxpose.xlu1.b32.cont [3/9] (short) %v271_v2, 128 }
  0x9e   : > { %423 = vxpose.xlu0.b32.cont [4/9] (short) %v289_v7, 128  ;;  %487 = vxpose.xlu1.b32.cont [4/9] (short) %v291_v3, 128 }
  0xa2   : > { %424 = vxpose.xlu0.b32.cont [5/9] (short) %v309_v6, 128  ;;  %488 = vxpose.xlu1.b32.cont [5/9] (short) %v311_v11, 128 }
  0xa6   : > { %425 = vxpose.xlu0.b32.cont [6/9] (short) %v329_v14, 128  ;;  %489 = vxpose.xlu1.b32.cont [6/9] (short) %v331_v15, 128 }
  0xaa   : > { %426 = vxpose.xlu0.b32.cont [7/9] (short) %v349_v18, 128  ;;  %490 = vxpose.xlu1.b32.cont [7/9] (short) %v351_v19, 128 }
  0xae   : > { %427 = vxpose.xlu0.b32.cont [8/9] (short) %v369_v21, 128  ;;  %491 = vxpose.xlu1.b32.cont [8/9] (short) %v371_v22, 128 }
  0xb2   : > { %428 = vxpose.xlu0.b32.end [9/9] (short) %v209_v53, 128  ;;  %492 = vxpose.xlu1.b32.end [9/9] (short) %v211_v54, 128 }
  0xd1   : > { %v468_v23 = vpop.trf.xlu1  ;;  %v404_v24 = vpop.trf.xlu0 }
  0xd2   : > { %2207 = vmatprep.mubr.msk.f32.mxu0 %vm516_vm0, %v404_v24  ;;  %2255 = vmatprep.mubr.msk.f32.mxu1 %vm516_vm0, %v468_v23  ;;  %v3077_v23 = vld [vmem:[%s3794_s2] ss:$0 sm:$0xff] }
  0xd5   : > { %v469_v25 = vpop.trf.xlu1  ;;  %v405_v26 = vpop.trf.xlu0 }
  0xd6   : > { %2208 = vmatmul.mubr.msk.f32.vlgmr.msra.gmra.mxu0 %vm516_vm0, %v405_v26  ;;  %2256 = vmatmul.mubr.msk.f32.vlgmr.msra.gmra.mxu1 %vm516_vm0, %v469_v25 }
  0xd9   : > { %v470_v27 = vpop.trf.xlu1  ;;  %v406_v28 = vpop.trf.xlu0 }
  0xda   : > { %2210 = vmatprep.mubr.msk.f32.mxu0 %vm516_vm0, %v406_v28  ;;  %2258 = vmatprep.mubr.msk.f32.mxu1 %vm516_vm0, %v470_v27 }
  0xdd   : > { %v471_v29 = vpop.trf.xlu1  ;;  %v407_v30 = vpop.trf.xlu0 }
  0xde   : > { %2211 = vmatmul.mubr.msk.f32.gmra.mxu0 %vm516_vm0, %v407_v30  ;;  %2259 = vmatmul.mubr.msk.f32.gmra.mxu1 %vm516_vm0, %v471_v29 }
  0xe1   : > { %v408_v31 = vpop.trf.xlu0  ;;  %v472_v32 = vpop.trf.xlu1 }
  0xe2   : > { %2213 = vmatprep.mubr.msk.f32.mxu0 %vm516_vm0, %v408_v31  ;;  %2261 = vmatprep.mubr.msk.f32.mxu1 %vm516_vm0, %v472_v32 }
  0xe5   : > { %v409_v33 = vpop.trf.xlu0  ;;  %v473_v34 = vpop.trf.xlu1 }
  0xe6   : > { %2214 = vmatmul.mubr.msk.f32.gmra.mxu0 %vm516_vm0, %v409_v33  ;;  %2262 = vmatmul.mubr.msk.f32.gmra.mxu1 %vm516_vm0, %v473_v34 }
  0xe9   : > { %v410_v35 = vpop.trf.xlu0  ;;  %v474_v36 = vpop.trf.xlu1 }
  0xea   : > { %2216 = vmatprep.mubr.msk.f32.mxu0 %vm516_vm0, %v410_v35  ;;  %2264 = vmatprep.mubr.msk.f32.mxu1 %vm516_vm0, %v474_v36 }
  0xed   : > { %v411_v37 = vpop.trf.xlu0  ;;  %v475_v38 = vpop.trf.xlu1 }
  0xee   : > { %2217 = vmatmul.mubr.msk.f32.gmra.mxu0 %vm516_vm0, %v411_v37  ;;  %2265 = vmatmul.mubr.msk.f32.gmra.mxu1 %vm516_vm0, %v475_v38 }
  0xf1   : > { %v412_v39 = vpop.trf.xlu0  ;;  %v476_v40 = vpop.trf.xlu1 }
  0xf2   : > { %2219 = vmatprep.mubr.msk.f32.mxu0 %vm516_vm0, %v412_v39  ;;  %2267 = vmatprep.mubr.msk.f32.mxu1 %vm516_vm0, %v476_v40 }
  0xf5   : > { %v413_v41 = vpop.trf.xlu0  ;;  %v477_v42 = vpop.trf.xlu1 }
  0xf6   : > { %2220 = vmatmul.mubr.msk.f32.gmra.mxu0 %vm516_vm0, %v413_v41  ;;  %2268 = vmatmul.mubr.msk.f32.gmra.mxu1 %vm516_vm0, %v477_v42 }
  0xf9   : > { %v414_v43 = vpop.trf.xlu0  ;;  %v478_v44 = vpop.trf.xlu1 }
  0xfa   : > { %2222 = vmatprep.mubr.msk.f32.mxu0 %vm516_vm0, %v414_v43  ;;  %2270 = vmatprep.mubr.msk.f32.mxu1 %vm516_vm0, %v478_v44 }
  0xfd   : > { %v415_v45 = vpop.trf.xlu0  ;;  %v479_v46 = vpop.trf.xlu1 }
  0xfe   : > { %2223 = vmatmul.mubr.msk.f32.gmra.mxu0 %vm516_vm0, %v415_v45  ;;  %2271 = vmatmul.mubr.msk.f32.gmra.mxu1 %vm516_vm0, %v479_v46 }
 0x101   : > { %v416_v47 = vpop.trf.xlu0  ;;  %v480_v48 = vpop.trf.xlu1 }
 0x102   : > { %2225 = vmatprep.mubr.msk.f32.mxu0 %vm516_vm0, %v416_v47  ;;  %2273 = vmatprep.mubr.msk.f32.mxu1 %vm516_vm0, %v480_v48 }
 0x105   : > { %v417_v49 = vpop.trf.xlu0  ;;  %v481_v50 = vpop.trf.xlu1 }
 0x106   : > { %2226 = vmatmul.mubr.msk.f32.gmra.mxu0 %vm516_vm0, %v417_v49  ;;  %2274 = vmatmul.mubr.msk.f32.gmra.mxu1 %vm516_vm0, %v481_v50 }
 0x109   : > { %v418_v51 = vpop.trf.xlu0  ;;  %v482_v52 = vpop.trf.xlu1 }
 0x10a   : > { %2228 = vmatprep.mubr.msk.f32.mxu0 %vm516_vm0, %v418_v51  ;;  %2276 = vmatprep.mubr.msk.f32.mxu1 %vm516_vm0, %v482_v52 }
 0x10d   : > { %v419_v53 = vpop.trf.xlu0  ;;  %v483_v54 = vpop.trf.xlu1 }
 0x10e   : > { %2229 = vmatmul.mubr.msk.f32.gmra.mxu0 %vm516_vm0, %v419_v53  ;;  %2277 = vmatmul.mubr.msk.f32.gmra.mxu1 %vm516_vm0, %v483_v54 }
 0x111   : > { %v436_v55 = vpop.trf.xlu0  ;;  %v500_v56 = vpop.trf.xlu1 }
 0x112   : > { %2231 = vmatprep.mubr.msk.f32.mxu0 %vm516_vm0, %v436_v55  ;;  %2279 = vmatprep.mubr.msk.f32.mxu1 %vm516_vm0, %v500_v56 }
 0x115   : > { %v437_v57 = vpop.trf.xlu0  ;;  %v501_v58 = vpop.trf.xlu1 }
 0x116   : > { %2232 = vmatmul.mubr.msk.f32.gmra.mxu0 %vm516_vm0, %v437_v57  ;;  %2280 = vmatmul.mubr.msk.f32.gmra.mxu1 %vm516_vm0, %v501_v58 }
 0x119   : > { %v438_v59 = vpop.trf.xlu0  ;;  %v502_v60 = vpop.trf.xlu1 }
 0x11a   : > { %2234 = vmatprep.mubr.msk.f32.mxu0 %vm516_vm0, %v438_v59  ;;  %2282 = vmatprep.mubr.msk.f32.mxu1 %vm516_vm0, %v502_v60 }
 0x11d   : > { %v439_v61 = vpop.trf.xlu0  ;;  %v503_v62 = vpop.trf.xlu1 }
 0x11e   : > { %2235 = vmatmul.mubr.msk.f32.gmra.mxu0 %vm516_vm0, %v439_v61  ;;  %2283 = vmatmul.mubr.msk.f32.gmra.mxu1 %vm516_vm0, %v503_v62 }
 0x121   : > { %v440_v63 = vpop.trf.xlu0  ;;  %v504_v0 = vpop.trf.xlu1 }
 0x122   : > { %2237 = vmatprep.mubr.msk.f32.mxu0 %vm516_vm0, %v440_v63  ;;  %2285 = vmatprep.mubr.msk.f32.mxu1 %vm516_vm0, %v504_v0 }
 0x125   : > { %v441_v1 = vpop.trf.xlu0  ;;  %v505_v4 = vpop.trf.xlu1 }
 0x126   : > { %2238 = vmatmul.mubr.msk.f32.gmra.mxu0 %vm516_vm0, %v441_v1  ;;  %2286 = vmatmul.mubr.msk.f32.gmra.mxu1 %vm516_vm0, %v505_v4 }
 0x129   : > { %v442_v2 = vpop.trf.xlu0  ;;  %v506_v5 = vpop.trf.xlu1 }
 0x12a   : > { %2240 = vmatprep.mubr.msk.f32.mxu0 %vm516_vm0, %v442_v2  ;;  %2288 = vmatprep.mubr.msk.f32.mxu1 %vm516_vm0, %v506_v5 }
 0x12d   : > { %v443_v7 = vpop.trf.xlu0  ;;  %v507_v3 = vpop.trf.xlu1 }
 0x12e   : > { %2241 = vmatmul.mubr.msk.f32.gmra.mxu0 %vm516_vm0, %v443_v7  ;;  %2289 = vmatmul.mubr.msk.f32.gmra.mxu1 %vm516_vm0, %v507_v3 }
 0x131   : > { %v444_v8 = vpop.trf.xlu0  ;;  %v508_v9 = vpop.trf.xlu1 }
 0x132   : > { %2243 = vmatprep.mubr.msk.f32.mxu0 %vm516_vm0, %v444_v8  ;;  %2291 = vmatprep.mubr.msk.f32.mxu1 %vm516_vm0, %v508_v9 }
 0x135   : > { %v445_v10 = vpop.trf.xlu0  ;;  %v509_v6 = vpop.trf.xlu1 }
 0x136   : > { %2244 = vmatmul.mubr.msk.f32.gmra.mxu0 %vm516_vm0, %v445_v10  ;;  %2292 = vmatmul.mubr.msk.f32.gmra.mxu1 %vm516_vm0, %v509_v6 }
 0x139   : > { %v446_v11 = vpop.trf.xlu0  ;;  %v510_v12 = vpop.trf.xlu1 }
 0x13a   : > { %2246 = vmatprep.mubr.msk.f32.mxu0 %vm516_vm0, %v446_v11  ;;  %2294 = vmatprep.mubr.msk.f32.mxu1 %vm516_vm0, %v510_v12 }
 0x13d   : > { %v447_v13 = vpop.trf.xlu0  ;;  %v511_v14 = vpop.trf.xlu1 }
 0x13e   : > { %2247 = vmatmul.mubr.msk.f32.gmra.mxu0 %vm516_vm0, %v447_v13  ;;  %2295 = vmatmul.mubr.msk.f32.gmra.mxu1 %vm516_vm0, %v511_v14 }
 0x141   : > { %v448_v15 = vpop.trf.xlu0  ;;  %v512_v16 = vpop.trf.xlu1 }
 0x142   : > { %2249 = vmatprep.mubr.msk.f32.mxu0 %vm516_vm0, %v448_v15  ;;  %2297 = vmatprep.mubr.msk.f32.mxu1 %vm516_vm0, %v512_v16 }
 0x145   : > { %v449_v17 = vpop.trf.xlu0  ;;  %v513_v18 = vpop.trf.xlu1 }
 0x146   : > { %2250 = vmatmul.mubr.msk.f32.gmra.mxu0 %vm516_vm0, %v449_v17  ;;  %2298 = vmatmul.mubr.msk.f32.gmra.mxu1 %vm516_vm0, %v513_v18 }
 0x149   : > { %v450_v19 = vpop.trf.xlu0  ;;  %v514_v20 = vpop.trf.xlu1 }
 0x14a   : > { %2252 = vmatprep.mubr.msk.f32.mxu0 %vm516_vm0, %v450_v19  ;;  %2300 = vmatprep.mubr.msk.f32.mxu1 %vm516_vm0, %v514_v20 }
 0x14d   : > { %v451_v21 = vpop.trf.xlu0  ;;  %v515_v22 = vpop.trf.xlu1 }
 0x14e   : > { %2253 = vmatmul.mubr.msk.f32.gmra.mxu0 %vm516_vm0, %v451_v21  ;;  %2301 = vmatmul.mubr.msk.f32.gmra.mxu1 %vm516_vm0, %v515_v22 }
 0x196   : > { %v2209_v24 = vpop.f32.mrf.mxu0  ;;  %v2257_v25 = vpop.f32.mrf.mxu1 }
 0x197   : > { %v3080_v26 = vadd.f32 %v2209_v24, %v3077_v23  ;;  %v3086_v29 = vadd.f32 %v2257_v25, %v3077_v23 }
 0x198   : > { %v775_v27 = vpop.f32.mrf.mxu0  ;;  %v935_v30 = vpop.f32.mrf.mxu1 }
 0x199   : > { %v3083_v28 = vadd.f32 %v3077_v23, %v775_v27  ;;  %1096 = vmax.xlane.f32.xlu1 %v3080_v26  ;;  %v3091_v31 = vadd.f32 %v3077_v23, %v935_v30 }
 0x19b   : > { %1094 = vmax.xlane.f32.xlu0 %v3083_v28 }
 0x19d   : > { %1160 = vmax.xlane.f32.xlu1 %v3086_v29 }
 0x19e   : > { %v2212_v32 = vpop.f32.mrf.mxu0  ;;  %v2260_v33 = vpop.f32.mrf.mxu1 }
 0x19f   : > { %v3095_v34 = vadd.f32 %v2212_v32, %v3077_v23  ;;  %1158 = vmax.xlane.f32.xlu0 %v3091_v31  ;;  %v3099_v36 = vadd.f32 %v2260_v33, %v3077_v23 }
 0x1a0   : > { %v945_v35 = vpop.f32.mrf.mxu1  ;;  %v785_v38 = vpop.f32.mrf.mxu0 }
 0x1a1   : > { %v3102_v37 = vadd.f32 %v3077_v23, %v945_v35  ;;  %1100 = vmax.xlane.f32.xlu1 %v3095_v34  ;;  %v3108_v41 = vadd.f32 %v3077_v23, %v785_v38 }
 0x1a3   : > { %1162 = vmax.xlane.f32.xlu0 %v3102_v37 }
 0x1a5   : > { %1164 = vmax.xlane.f32.xlu1 %v3099_v36 }
 0x1a6   : > { %v2215_v39 = vpop.f32.mrf.mxu0  ;;  %v2263_v40 = vpop.f32.mrf.mxu1 }
 0x1a7   : > { %v3111_v44 = vadd.f32 %v2215_v39, %v3077_v23  ;;  %v3122_v47 = vadd.f32 %v2263_v40, %v3077_v23 }
 0x1a8   : > { %v795_v42 = vpop.f32.mrf.mxu0  ;;  %v955_v43 = vpop.f32.mrf.mxu1 }
 0x1a9   : > { %v3114_v45 = vadd.f32 %v3077_v23, %v795_v42  ;;  %1098 = vmax.xlane.f32.xlu1 %v3108_v41  ;;  %v3119_v46 = vadd.f32 %v3077_v23, %v955_v43 }
 0x1ab   : > { %1102 = vmax.xlane.f32.xlu0 %v3114_v45 }
 0x1ad   : > { %1104 = vmax.xlane.f32.xlu1 %v3111_v44 }
 0x1ae   : > { %v2218_v48 = vpop.f32.mrf.mxu0  ;;  %v2266_v49 = vpop.f32.mrf.mxu1 }
 0x1af   : > { %1166 = vmax.xlane.f32.xlu0 %v3119_v46  ;;  %v3127_v52 = vadd.f32 %v2218_v48, %v3077_v23  ;;  %v3138_v55 = vadd.f32 %v2266_v49, %v3077_v23 }
 0x1b0   : > { %v805_v50 = vpop.f32.mrf.mxu0  ;;  %v965_v51 = vpop.f32.mrf.mxu1 }
 0x1b1   : > { %v3130_v53 = vadd.f32 %v3077_v23, %v805_v50  ;;  %1168 = vmax.xlane.f32.xlu1 %v3122_v47  ;;  %v3135_v54 = vadd.f32 %v3077_v23, %v965_v51 }
 0x1b3   : > { %1106 = vmax.xlane.f32.xlu0 %v3130_v53 }
 0x1b5   : > { %1108 = vmax.xlane.f32.xlu1 %v3127_v52 }
 0x1b6   : > { %v2221_v56 = vpop.f32.mrf.mxu0  ;;  %v2269_v57 = vpop.f32.mrf.mxu1 }
 0x1b7   : > { %1170 = vmax.xlane.f32.xlu0 %v3135_v54  ;;  %v3143_v60 = vadd.f32 %v2221_v56, %v3077_v23  ;;  %v3154_v63 = vadd.f32 %v2269_v57, %v3077_v23 }
 0x1b8   : > { %v815_v58 = vpop.f32.mrf.mxu0  ;;  %v975_v59 = vpop.f32.mrf.mxu1 }
 0x1b9   : > { %v3146_v61 = vadd.f32 %v3077_v23, %v815_v58  ;;  %1172 = vmax.xlane.f32.xlu1 %v3138_v55  ;;  %v3151_v62 = vadd.f32 %v3077_v23, %v975_v59 }
 0x1bb   : > { %1110 = vmax.xlane.f32.xlu0 %v3146_v61 }
 0x1bd   : > { %1112 = vmax.xlane.f32.xlu1 %v3143_v60 }
 0x1be   : > { %v2224_v0 = vpop.f32.mrf.mxu0  ;;  %v2272_v1 = vpop.f32.mrf.mxu1 }
 0x1bf   : > { %1174 = vmax.xlane.f32.xlu0 %v3151_v62  ;;  %v3159_v5 = vadd.f32 %v2224_v0, %v3077_v23  ;;  %v3170_v8 = vadd.f32 %v2272_v1, %v3077_v23 }
 0x1c0   : > { %v825_v4 = vpop.f32.mrf.mxu0  ;;  %v985_v2 = vpop.f32.mrf.mxu1 }
 0x1c1   : > { %v3162_v7 = vadd.f32 %v3077_v23, %v825_v4  ;;  %1176 = vmax.xlane.f32.xlu1 %v3154_v63  ;;  %v3167_v3 = vadd.f32 %v3077_v23, %v985_v2 }
 0x1c3   : > { %1114 = vmax.xlane.f32.xlu0 %v3162_v7 }
 0x1c5   : > { %1116 = vmax.xlane.f32.xlu1 %v3159_v5 }
 0x1c6   : > { %v2227_v9 = vpop.f32.mrf.mxu0  ;;  %v2275_v10 = vpop.f32.mrf.mxu1 }
 0x1c7   : > { %1178 = vmax.xlane.f32.xlu0 %v3167_v3  ;;  %v3175_v12 = vadd.f32 %v2227_v9, %v3077_v23  ;;  %v3186_v15 = vadd.f32 %v2275_v10, %v3077_v23 }
 0x1c8   : > { %v835_v6 = vpop.f32.mrf.mxu0  ;;  %v995_v11 = vpop.f32.mrf.mxu1 }
 0x1c9   : > { %v3178_v13 = vadd.f32 %v3077_v23, %v835_v6  ;;  %1180 = vmax.xlane.f32.xlu1 %v3170_v8  ;;  %v3183_v14 = vadd.f32 %v3077_v23, %v995_v11 }
 0x1cb   : > { %1118 = vmax.xlane.f32.xlu0 %v3178_v13 }
 0x1cd   : > { %1120 = vmax.xlane.f32.xlu1 %v3175_v12 }
 0x1ce   : > { %v2230_v16 = vpop.f32.mrf.mxu0  ;;  %v2278_v17 = vpop.f32.mrf.mxu1 }
 0x1cf   : > { %1182 = vmax.xlane.f32.xlu0 %v3183_v14  ;;  %v3191_v20 = vadd.f32 %v2230_v16, %v3077_v23  ;;  %v3202_v24 = vadd.f32 %v2278_v17, %v3077_v23 }
 0x1d0   : > { %v845_v18 = vpop.f32.mrf.mxu0  ;;  %v1005_v19 = vpop.f32.mrf.mxu1 }
 0x1d1   : > { %v3194_v21 = vadd.f32 %v3077_v23, %v845_v18  ;;  %1184 = vmax.xlane.f32.xlu1 %v3186_v15  ;;  %v3199_v22 = vadd.f32 %v3077_v23, %v1005_v19 }
 0x1d3   : > { %1122 = vmax.xlane.f32.xlu0 %v3194_v21 }
 0x1d5   : > { %1124 = vmax.xlane.f32.xlu1 %v3191_v20 }
 0x1d6   : > { %v2233_v25 = vpop.f32.mrf.mxu0  ;;  %v2281_v27 = vpop.f32.mrf.mxu1 }
 0x1d7   : > { %1186 = vmax.xlane.f32.xlu0 %v3199_v22  ;;  %v3207_v33 = vadd.f32 %v2233_v25, %v3077_v23  ;;  %v3218_v39 = vadd.f32 %v2281_v27, %v3077_v23 }
 0x1d8   : > { %v855_v30 = vpop.f32.mrf.mxu0  ;;  %v1015_v32 = vpop.f32.mrf.mxu1 }
 0x1d9   : > { %v3210_v35 = vadd.f32 %v3077_v23, %v855_v30  ;;  %1188 = vmax.xlane.f32.xlu1 %v3202_v24  ;;  %v3215_v38 = vadd.f32 %v3077_v23, %v1015_v32 }
 0x1db   : > { %1126 = vmax.xlane.f32.xlu0 %v3210_v35 }
 0x1dd   : > { %1128 = vmax.xlane.f32.xlu1 %v3207_v33 }
 0x1de   : > { %v2236_v40 = vpop.f32.mrf.mxu0  ;;  %v2284_v42 = vpop.f32.mrf.mxu1 }
 0x1df   : > { %1190 = vmax.xlane.f32.xlu0 %v3215_v38  ;;  %v3223_v49 = vadd.f32 %v2236_v40, %v3077_v23  ;;  %v3234_v56 = vadd.f32 %v2284_v42, %v3077_v23 }
 0x1e0   : > { %v865_v43 = vpop.f32.mrf.mxu0  ;;  %v1025_v48 = vpop.f32.mrf.mxu1 }
 0x1e1   : > { %v3226_v50 = vadd.f32 %v3077_v23, %v865_v43  ;;  %1192 = vmax.xlane.f32.xlu1 %v3218_v39  ;;  %v3231_v51 = vadd.f32 %v3077_v23, %v1025_v48 }
 0x1e3   : > { %1130 = vmax.xlane.f32.xlu0 %v3226_v50 }
 0x1e5   : > { %1132 = vmax.xlane.f32.xlu1 %v3223_v49 }
 0x1e6   : > { %v2239_v57 = vpop.f32.mrf.mxu0  ;;  %v2287_v58 = vpop.f32.mrf.mxu1 }
 0x1e7   : > { %1194 = vmax.xlane.f32.xlu0 %v3231_v51  ;;  %v3239_v1 = vadd.f32 %v2239_v57, %v3077_v23  ;;  %v3250_v9 = vadd.f32 %v2287_v58, %v3077_v23 }
 0x1e8   : > { %v875_v59 = vpop.f32.mrf.mxu0  ;;  %v1035_v0 = vpop.f32.mrf.mxu1 }
 0x1e9   : > { %v3242_v4 = vadd.f32 %v3077_v23, %v875_v59  ;;  %1196 = vmax.xlane.f32.xlu1 %v3234_v56  ;;  %v3247_v2 = vadd.f32 %v3077_v23, %v1035_v0 }
 0x1eb   : > { %1134 = vmax.xlane.f32.xlu0 %v3242_v4 }
 0x1ed   : > { %1136 = vmax.xlane.f32.xlu1 %v3239_v1 }
 0x1ee   : > { %v2242_v10 = vpop.f32.mrf.mxu0  ;;  %v2290_v6 = vpop.f32.mrf.mxu1 }
 0x1ef   : > { %1198 = vmax.xlane.f32.xlu0 %v3247_v2  ;;  %v3255_v17 = vadd.f32 %v2242_v10, %v3077_v23  ;;  %v3266_v25 = vadd.f32 %v2290_v6, %v3077_v23 }
 0x1f0   : > { %v885_v11 = vpop.f32.mrf.mxu0  ;;  %v1045_v16 = vpop.f32.mrf.mxu1 }
 0x1f1   : > { %v3258_v18 = vadd.f32 %v3077_v23, %v885_v11  ;;  %1200 = vmax.xlane.f32.xlu1 %v3250_v9  ;;  %v3263_v19 = vadd.f32 %v3077_v23, %v1045_v16 }
 0x1f3   : > { %1138 = vmax.xlane.f32.xlu0 %v3258_v18 }
 0x1f5   : > { %1140 = vmax.xlane.f32.xlu1 %v3255_v17 }
 0x1f6   : > { %v2245_v27 = vpop.f32.mrf.mxu0  ;;  %v2293_v30 = vpop.f32.mrf.mxu1 }
 0x1f7   : > { %1202 = vmax.xlane.f32.xlu0 %v3263_v19  ;;  %v3271_v42 = vadd.f32 %v2245_v27, %v3077_v23  ;;  %v3282_v57 = vadd.f32 %v2293_v30, %v3077_v23 }
 0x1f8   : > { %v895_v32 = vpop.f32.mrf.mxu0  ;;  %v1055_v40 = vpop.f32.mrf.mxu1 }
 0x1f9   : > { %v3274_v43 = vadd.f32 %v3077_v23, %v895_v32  ;;  %1204 = vmax.xlane.f32.xlu1 %v3266_v25  ;;  %v3279_v48 = vadd.f32 %v3077_v23, %v1055_v40  ;;  %3849 = vst [vmem:[#allocation12_spill] sm:$0xff] %v3282_v57 }
 0x1fb   : > { %1142 = vmax.xlane.f32.xlu0 %v3274_v43  ;;  %3848 = vst [vmem:[#allocation11_spill] sm:$0xff] %v3279_v48 }
 0x1fd   : > { %1144 = vmax.xlane.f32.xlu1 %v3271_v42 }
 0x1fe   : > { %v2248_v58 = vpop.f32.mrf.mxu0  ;;  %v2296_v59 = vpop.f32.mrf.mxu1 }
 0x1ff   : > { %1206 = vmax.xlane.f32.xlu0 %v3279_v48  ;;  %v3287_v6 = vadd.f32 %v2248_v58, %v3077_v23  ;;  %v3298_v27 = vadd.f32 %v2296_v59, %v3077_v23 }
 0x200   : > { %v905_v0 = vpop.f32.mrf.mxu0  ;;  %v1065_v10 = vpop.f32.mrf.mxu1 }
 0x201   : > { %3850 = vst [vmem:[#allocation13_spill] sm:$0xff] %v3287_v6  ;;  %v3290_v11 = vadd.f32 %v3077_v23, %v905_v0  ;;  %1208 = vmax.xlane.f32.xlu1 %v3282_v57  ;;  %v3295_v16 = vadd.f32 %v3077_v23, %v1065_v10  ;;  %3853 = vst [vmem:[#allocation16_spill] sm:$0xff] %v3298_v27 }
 0x203   : > { %3851 = vst [vmem:[#allocation14_spill] sm:$0xff] %v3290_v11  ;;  %1146 = vmax.xlane.f32.xlu0 %v3290_v11  ;;  %3852 = vst [vmem:[#allocation15_spill] sm:$0xff] %v3295_v16 }
 0x205   : > { %1148 = vmax.xlane.f32.xlu1 %v3287_v6 }
 0x206   : > { %v2251_v30 = vpop.f32.mrf.mxu0  ;;  %v2299_v32 = vpop.f32.mrf.mxu1 }
 0x207   : > { %1210 = vmax.xlane.f32.xlu0 %v3295_v16  ;;  %v3303_v0 = vadd.f32 %v2251_v30, %v3077_v23  ;;  %v3314_v10 = vadd.f32 %v2299_v32, %v3077_v23 }
 0x208   : > { %v915_v40 = vpop.f32.mrf.mxu0  ;;  %v1075_v58 = vpop.f32.mrf.mxu1 }
 0x209   : > { %3854 = vst [vmem:[#allocation17_spill] sm:$0xff] %v3303_v0  ;;  %v3306_v57 = vadd.f32 %v3077_v23, %v915_v40  ;;  %1212 = vmax.xlane.f32.xlu1 %v3298_v27  ;;  %v3311_v59 = vadd.f32 %v3077_v23, %v1075_v58  ;;  %3857 = vst [vmem:[#allocation20_spill] sm:$0xff] %v3314_v10 }
 0x20b   : > { %3855 = vst [vmem:[#allocation18_spill] sm:$0xff] %v3306_v57  ;;  %1150 = vmax.xlane.f32.xlu0 %v3306_v57  ;;  %3856 = vst [vmem:[#allocation19_spill] sm:$0xff] %v3311_v59 }
 0x20d   : > { %1152 = vmax.xlane.f32.xlu1 %v3303_v0 }
 0x20e   : > { %v2254_v16 = vpop.f32.mrf.mxu0  ;;  %v2302_v6 = vpop.f32.mrf.mxu1 }
 0x20f   : > { %1214 = vmax.xlane.f32.xlu0 %v3311_v59  ;;  %v3319_v40 = vadd.f32 %v2254_v16, %v3077_v23  ;;  %v3330_v58 = vadd.f32 %v2302_v6, %v3077_v23 }
 0x210   : > { %v925_v30 = vpop.f32.mrf.mxu0  ;;  %v1085_v11 = vpop.f32.mrf.mxu1 }
 0x211   : > { %3858 = vst [vmem:[#allocation21_spill] sm:$0xff] %v3319_v40  ;;  %v3322_v27 = vadd.f32 %v3077_v23, %v925_v30  ;;  %1216 = vmax.xlane.f32.xlu1 %v3314_v10  ;;  %v3327_v32 = vadd.f32 %v3077_v23, %v1085_v11  ;;  %3861 = vst [vmem:[#allocation24_spill] sm:$0xff] %v3330_v58 }
 0x213   : > { %3859 = vst [vmem:[#allocation22_spill] sm:$0xff] %v3322_v27  ;;  %1154 = vmax.xlane.f32.xlu0 %v3322_v27  ;;  %3860 = vst [vmem:[#allocation23_spill] sm:$0xff] %v3327_v32 }
 0x215   : > { %1156 = vmax.xlane.f32.xlu1 %v3319_v40 }
 0x217   : > { %1218 = vmax.xlane.f32.xlu0 %v3327_v32 }
 0x219   : > { %1220 = vmax.xlane.f32.xlu1 %v3330_v58 }
 0x222   : > { %v1097_v16 = vpop.xlane.xlu1 %1096 }
 0x223   : > { %v1223_v30 = vsub.f32 %v3080_v26, %v1097_v16 }
 0x224   : > { %v1095_v59 = vpop.xlane.xlu0 %1094 }
 0x225   : > { %v1288_v0 = vmul.f32 1.442695, %v1223_v30  ;;  %v1222_v10 = vsub.f32 %v3083_v28, %v1095_v59 }
 0x226   : > { %v1161_v27 = vpop.xlane.xlu1 %1160 }
 0x227   : > { %2382 = vpow2.f32 %v1288_v0  ;;  %v1286_v11 = vmul.f32 1.442695, %v1222_v10  ;;  %v1255_v57 = vsub.f32 %v3086_v29, %v1161_v27 }
 0x228   : > { %v1159_v23 = vpop.xlane.xlu0 %1158 }
 0x229   : > { %2384 = vpow2.f32 %v1286_v11  ;;  %v1352_v6 = vmul.f32 1.442695, %v1255_v57  ;;  %v1254_v40 = vsub.f32 %v3091_v31, %v1159_v23 }
 0x22a   : > { %v1101_v32 = vpop.xlane.xlu1 %1100 }
 0x22b   : > { %2386 = vpow2.f32 %v1352_v6  ;;  %v1350_v58 = vmul.f32 1.442695, %v1254_v40  ;;  %v1225_v48 = vsub.f32 %v3095_v34, %v1101_v32 }
 0x22c   : > { %v1163_v28 = vpop.xlane.xlu0 %1162 }
 0x22d   : > { %2388 = vpow2.f32 %v1350_v58  ;;  %v1292_v26 = vmul.f32 1.442695, %v1225_v48  ;;  %v1256_v29 = vsub.f32 %v3102_v37, %v1163_v28 }
 0x22e   : > { %v1165_v16 = vpop.xlane.xlu1 %1164 }
 0x22f   : > { %2390 = vpow2.f32 %v1292_v26  ;;  %v1257_v0 = vsub.f32 %v3099_v36, %v1165_v16  ;;  %v1354_v48 = vmul.f32 1.442695, %v1256_v29 }
 0x231   : > { %v1356_v59 = vmul.f32 1.442695, %v1257_v0 }
 0x232   : > { %v1099_v27 = vpop.xlane.xlu1 %1098 }
 0x233   : > { %2392 = vpow2.f32 %v1356_v59  ;;  %v1224_v57 = vsub.f32 %v3108_v41, %v1099_v27 }
 0x234   : > { %v3343_v31 = vpop.eup %2382  ;;  %v1103_v10 = vpop.xlane.xlu0 %1102 }
 0x235   : > { %v1290_v40 = vmul.f32 1.442695, %v1224_v57  ;;  %1416 = vadd.xlane.f32.xlu1 %v3343_v31  ;;  %v1226_v32 = vsub.f32 %v3114_v45, %v1103_v10 }
 0x236   : > { %v3346_v34 = vpop.eup %2384  ;;  %v1105_v58 = vpop.xlane.xlu1 %1104 }
 0x237   : > { %2394 = vpow2.f32 %v1290_v40  ;;  %v1227_v36 = vsub.f32 %v3111_v44, %v1105_v58  ;;  %1414 = vadd.xlane.f32.xlu0 %v3346_v34  ;;  %v1294_v23 = vmul.f32 1.442695, %v1226_v32 }
 0x238   : > { %v3351_v37 = vpop.eup %2386  ;;  %v1167_v41 = vpop.xlane.xlu0 %1166  ;;  %2396 = vpow2.f32 %v1354_v48 }
 0x239   : > { %v1296_v30 = vmul.f32 1.442695, %v1227_v36  ;;  %1480 = vadd.xlane.f32.xlu1 %v3351_v37  ;;  %v1258_v6 = vsub.f32 %v3119_v46, %v1167_v41 }
 0x23a   : > { %v3354_v11 = vpop.eup %2388  ;;  %v1169_v26 = vpop.xlane.xlu1 %1168 }
 0x23b   : > { %2398 = vpow2.f32 %v1296_v30  ;;  %v1259_v45 = vsub.f32 %v3122_v47, %v1169_v26  ;;  %1478 = vadd.xlane.f32.xlu0 %v3354_v11  ;;  %v1358_v0 = vmul.f32 1.442695, %v1258_v6 }
 0x23c   : > { %v3359_v44 = vpop.eup %2390  ;;  %v1107_v16 = vpop.xlane.xlu0 %1106  ;;  %2400 = vpow2.f32 %v1294_v23 }
 0x23d   : > { %v1360_v28 = vmul.f32 1.442695, %v1259_v45  ;;  %1420 = vadd.xlane.f32.xlu1 %v3359_v44  ;;  %v1228_v59 = vsub.f32 %v3130_v53, %v1107_v16 }
 0x23e   : > { %v1109_v29 = vpop.xlane.xlu1 %1108 }
 0x23f   : > { %2402 = vpow2.f32 %v1360_v28  ;;  %v1229_v46 = vsub.f32 %v3127_v52, %v1109_v29  ;;  %v1298_v10 = vmul.f32 1.442695, %v1228_v59 }
 0x240   : > { %v3364_v27 = vpop.eup %2392  ;;  %v1171_v57 = vpop.xlane.xlu0 %1170  ;;  %2404 = vpow2.f32 %v1358_v0 }
 0x241   : > { %v1300_v47 = vmul.f32 1.442695, %v1229_v46  ;;  %1484 = vadd.xlane.f32.xlu1 %v3364_v27  ;;  %v1260_v40 = vsub.f32 %v3135_v54, %v1171_v57 }
 0x242   : > { %v1173_v48 = vpop.xlane.xlu1 %1172 }
 0x243   : > { %2406 = vpow2.f32 %v1300_v47  ;;  %v1261_v32 = vsub.f32 %v3138_v55, %v1173_v48  ;;  %v1362_v52 = vmul.f32 1.442695, %v1260_v40 }
 0x244   : > { %v3369_v58 = vpop.eup %2394  ;;  %v1111_v53 = vpop.xlane.xlu0 %1110  ;;  %2408 = vpow2.f32 %v1298_v10 }
 0x245   : > { %v1364_v36 = vmul.f32 1.442695, %v1261_v32  ;;  %1418 = vadd.xlane.f32.xlu0 %v3369_v58  ;;  %v1230_v41 = vsub.f32 %v3146_v61, %v1111_v53  ;;  %v3373_v23 = vpop.eup %2396 }
 0x246   : > { %v1113_v30 = vpop.xlane.xlu1 %1112 }
 0x247   : > { %2410 = vpow2.f32 %v1364_v36  ;;  %v1231_v54 = vsub.f32 %v3143_v60, %v1113_v30  ;;  %v1302_v45 = vmul.f32 1.442695, %v1230_v41 }
 0x248   : > { %v3376_v6 = vpop.eup %2398  ;;  %v1175_v26 = vpop.xlane.xlu0 %1174  ;;  %2412 = vpow2.f32 %v1362_v52 }
 0x249   : > { %v1304_v55 = vmul.f32 1.442695, %v1231_v54  ;;  %1424 = vadd.xlane.f32.xlu1 %v3376_v6  ;;  %1482 = vadd.xlane.f32.xlu0 %v3373_v23  ;;  %v1262_v16 = vsub.f32 %v3151_v62, %v1175_v26  ;;  %v3381_v61 = vpop.eup %2400 }
 0x24a   : > { %v1177_v28 = vpop.xlane.xlu1 %1176 }
 0x24b   : > { %2414 = vpow2.f32 %v1304_v55  ;;  %v1263_v0 = vsub.f32 %v3154_v63, %v1177_v28  ;;  %v1366_v46 = vmul.f32 1.442695, %v1262_v16 }
 0x24c   : > { %v3384_v59 = vpop.eup %2402  ;;  %v1115_v60 = vpop.xlane.xlu0 %1114  ;;  %2416 = vpow2.f32 %v1302_v45 }
 0x24d   : > { %v1368_v29 = vmul.f32 1.442695, %v1263_v0  ;;  %1488 = vadd.xlane.f32.xlu1 %v3384_v59  ;;  %1422 = vadd.xlane.f32.xlu0 %v3381_v61  ;;  %v1232_v57 = vsub.f32 %v3162_v7, %v1115_v60  ;;  %v3389_v62 = vpop.eup %2404 }
 0x24e   : > { %v1117_v47 = vpop.xlane.xlu1 %1116 }
 0x24f   : > { %2418 = vpow2.f32 %v1368_v29  ;;  %v1233_v10 = vsub.f32 %v3159_v5, %v1117_v47  ;;  %v1306_v32 = vmul.f32 1.442695, %v1232_v57 }
 0x250   : > { %v3392_v40 = vpop.eup %2406  ;;  %v1179_v63 = vpop.xlane.xlu0 %1178  ;;  %2420 = vpow2.f32 %v1366_v46 }
 0x251   : > { %v1308_v48 = vmul.f32 1.442695, %v1233_v10  ;;  %1428 = vadd.xlane.f32.xlu1 %v3392_v40  ;;  %1486 = vadd.xlane.f32.xlu0 %v3389_v62  ;;  %v1264_v53 = vsub.f32 %v3167_v3, %v1179_v63  ;;  %v3397_v7 = vpop.eup %2408 }
 0x252   : > { %v1181_v36 = vpop.xlane.xlu1 %1180 }
 0x253   : > { %2422 = vpow2.f32 %v1308_v48  ;;  %v1265_v52 = vsub.f32 %v3170_v8, %v1181_v36  ;;  %v1370_v54 = vmul.f32 1.442695, %v1264_v53 }
 0x254   : > { %v3400_v41 = vpop.eup %2410  ;;  %v1119_v5 = vpop.xlane.xlu0 %1118  ;;  %2424 = vpow2.f32 %v1306_v32 }
 0x255   : > { %v1372_v30 = vmul.f32 1.442695, %v1265_v52  ;;  %1492 = vadd.xlane.f32.xlu1 %v3400_v41  ;;  %1426 = vadd.xlane.f32.xlu0 %v3397_v7  ;;  %v1234_v26 = vsub.f32 %v3178_v13, %v1119_v5  ;;  %v3405_v3 = vpop.eup %2412 }
 0x256   : > { %v1121_v55 = vpop.xlane.xlu1 %1120 }
 0x257   : > { %2426 = vpow2.f32 %v1372_v30  ;;  %v1235_v45 = vsub.f32 %v3175_v12, %v1121_v55  ;;  %v1310_v0 = vmul.f32 1.442695, %v1234_v26 }
 0x258   : > { %v3408_v16 = vpop.eup %2414  ;;  %v1183_v8 = vpop.xlane.xlu0 %1182  ;;  %2428 = vpow2.f32 %v1370_v54 }
 0x259   : > { %v1312_v28 = vmul.f32 1.442695, %v1235_v45  ;;  %1432 = vadd.xlane.f32.xlu1 %v3408_v16  ;;  %1490 = vadd.xlane.f32.xlu0 %v3405_v3  ;;  %v1266_v60 = vsub.f32 %v3183_v14, %v1183_v8  ;;  %v3413_v13 = vpop.eup %2416 }
 0x25a   : > { %v1185_v29 = vpop.xlane.xlu1 %1184 }
 0x25b   : > { %2430 = vpow2.f32 %v1312_v28  ;;  %v1267_v46 = vsub.f32 %v3186_v15, %v1185_v29  ;;  %v1374_v10 = vmul.f32 1.442695, %v1266_v60 }
 0x25c   : > { %v3416_v57 = vpop.eup %2418  ;;  %v1123_v12 = vpop.xlane.xlu0 %1122  ;;  %2432 = vpow2.f32 %v1310_v0 }
 0x25d   : > { %v1376_v47 = vmul.f32 1.442695, %v1267_v46  ;;  %1496 = vadd.xlane.f32.xlu1 %v3416_v57  ;;  %1430 = vadd.xlane.f32.xlu0 %v3413_v13  ;;  %v1236_v63 = vsub.f32 %v3194_v21, %v1123_v12  ;;  %v3421_v14 = vpop.eup %2420 }
 0x25e   : > { %v1125_v48 = vpop.xlane.xlu1 %1124 }
 0x25f   : > { %2434 = vpow2.f32 %v1376_v47  ;;  %v1237_v32 = vsub.f32 %v3191_v20, %v1125_v48  ;;  %v1314_v52 = vmul.f32 1.442695, %v1236_v63 }
 0x260   : > { %v3424_v53 = vpop.eup %2422  ;;  %v1187_v15 = vpop.xlane.xlu0 %1186  ;;  %2436 = vpow2.f32 %v1374_v10 }
 0x261   : > { %v1316_v36 = vmul.f32 1.442695, %v1237_v32  ;;  %1436 = vadd.xlane.f32.xlu1 %v3424_v53  ;;  %1494 = vadd.xlane.f32.xlu0 %v3421_v14  ;;  %v1268_v5 = vsub.f32 %v3199_v22, %v1187_v15  ;;  %v3429_v21 = vpop.eup %2424 }
 0x262   : > { %v1189_v30 = vpop.xlane.xlu1 %1188 }
 0x263   : > { %2438 = vpow2.f32 %v1316_v36  ;;  %v1269_v54 = vsub.f32 %v3202_v24, %v1189_v30  ;;  %v1378_v45 = vmul.f32 1.442695, %v1268_v5 }
 0x264   : > { %v3432_v26 = vpop.eup %2426  ;;  %v1127_v20 = vpop.xlane.xlu0 %1126  ;;  %2440 = vpow2.f32 %v1314_v52 }
 0x265   : > { %v1380_v55 = vmul.f32 1.442695, %v1269_v54  ;;  %1500 = vadd.xlane.f32.xlu1 %v3432_v26  ;;  %1434 = vadd.xlane.f32.xlu0 %v3429_v21  ;;  %v1238_v8 = vsub.f32 %v3210_v35, %v1127_v20  ;;  %v3437_v22 = vpop.eup %2428 }
 0x266   : > { %v1129_v28 = vpop.xlane.xlu1 %1128 }
 0x267   : > { %2442 = vpow2.f32 %v1380_v55  ;;  %v1239_v0 = vsub.f32 %v3207_v33, %v1129_v28  ;;  %v1318_v46 = vmul.f32 1.442695, %v1238_v8 }
 0x268   : > { %v3440_v60 = vpop.eup %2430  ;;  %v1191_v24 = vpop.xlane.xlu0 %1190  ;;  %2444 = vpow2.f32 %v1378_v45 }
 0x269   : > { %v1320_v29 = vmul.f32 1.442695, %v1239_v0  ;;  %1440 = vadd.xlane.f32.xlu1 %v3440_v60  ;;  %1498 = vadd.xlane.f32.xlu0 %v3437_v22  ;;  %v1270_v12 = vsub.f32 %v3215_v38, %v1191_v24  ;;  %v3445_v35 = vpop.eup %2432 }
 0x26a   : > { %v1193_v47 = vpop.xlane.xlu1 %1192 }
 0x26b   : > { %2446 = vpow2.f32 %v1320_v29  ;;  %v1271_v10 = vsub.f32 %v3218_v39, %v1193_v47  ;;  %v1382_v32 = vmul.f32 1.442695, %v1270_v12 }
 0x26c   : > { %v3448_v63 = vpop.eup %2434  ;;  %v1131_v33 = vpop.xlane.xlu0 %1130  ;;  %2448 = vpow2.f32 %v1318_v46 }
 0x26d   : > { %v1384_v48 = vmul.f32 1.442695, %v1271_v10  ;;  %1504 = vadd.xlane.f32.xlu1 %v3448_v63  ;;  %1438 = vadd.xlane.f32.xlu0 %v3445_v35  ;;  %v1240_v15 = vsub.f32 %v3226_v50, %v1131_v33  ;;  %v3453_v38 = vpop.eup %2436 }
 0x26e   : > { %v1133_v36 = vpop.xlane.xlu1 %1132 }
 0x26f   : > { %2450 = vpow2.f32 %v1384_v48  ;;  %v1241_v52 = vsub.f32 %v3223_v49, %v1133_v36  ;;  %v1322_v54 = vmul.f32 1.442695, %v1240_v15 }
 0x270   : > { %v3456_v5 = vpop.eup %2438  ;;  %v1195_v39 = vpop.xlane.xlu0 %1194  ;;  %2452 = vpow2.f32 %v1382_v32 }
 0x271   : > { %v1324_v30 = vmul.f32 1.442695, %v1241_v52  ;;  %1444 = vadd.xlane.f32.xlu1 %v3456_v5  ;;  %1502 = vadd.xlane.f32.xlu0 %v3453_v38  ;;  %v1272_v20 = vsub.f32 %v3231_v51, %v1195_v39  ;;  %v3461_v50 = vpop.eup %2440 }
 0x272   : > { %v1197_v55 = vpop.xlane.xlu1 %1196 }
 0x273   : > { %2454 = vpow2.f32 %v1324_v30  ;;  %v1273_v45 = vsub.f32 %v3234_v56, %v1197_v55  ;;  %v1386_v0 = vmul.f32 1.442695, %v1272_v20 }
 0x274   : > { %v3464_v8 = vpop.eup %2442  ;;  %v1135_v49 = vpop.xlane.xlu0 %1134  ;;  %2456 = vpow2.f32 %v1322_v54 }
 0x275   : > { %v1388_v28 = vmul.f32 1.442695, %v1273_v45  ;;  %1508 = vadd.xlane.f32.xlu1 %v3464_v8  ;;  %1442 = vadd.xlane.f32.xlu0 %v3461_v50  ;;  %v1242_v24 = vsub.f32 %v3242_v4, %v1135_v49  ;;  %v3469_v51 = vpop.eup %2444 }
 0x276   : > { %v1137_v29 = vpop.xlane.xlu1 %1136 }
 0x277   : > { %2458 = vpow2.f32 %v1388_v28  ;;  %v1243_v46 = vsub.f32 %v3239_v1, %v1137_v29  ;;  %v1326_v10 = vmul.f32 1.442695, %v1242_v24 }
 0x278   : > { %v3472_v12 = vpop.eup %2446  ;;  %v1199_v56 = vpop.xlane.xlu0 %1198  ;;  %2460 = vpow2.f32 %v1386_v0 }
 0x279   : > { %v1328_v47 = vmul.f32 1.442695, %v1243_v46  ;;  %1448 = vadd.xlane.f32.xlu1 %v3472_v12  ;;  %1506 = vadd.xlane.f32.xlu0 %v3469_v51  ;;  %v1274_v33 = vsub.f32 %v3247_v2, %v1199_v56  ;;  %v3477_v4 = vpop.eup %2448 }
 0x27a   : > { %v1201_v48 = vpop.xlane.xlu1 %1200 }
 0x27b   : > { %2462 = vpow2.f32 %v1328_v47  ;;  %v1275_v32 = vsub.f32 %v3250_v9, %v1201_v48  ;;  %v1390_v52 = vmul.f32 1.442695, %v1274_v33 }
 0x27c   : > { %v3480_v15 = vpop.eup %2450  ;;  %v1139_v1 = vpop.xlane.xlu0 %1138  ;;  %2464 = vpow2.f32 %v1326_v10 }
 0x27d   : > { %v1392_v36 = vmul.f32 1.442695, %v1275_v32  ;;  %1512 = vadd.xlane.f32.xlu1 %v3480_v15  ;;  %1446 = vadd.xlane.f32.xlu0 %v3477_v4  ;;  %v1244_v39 = vsub.f32 %v3258_v18, %v1139_v1  ;;  %v3485_v2 = vpop.eup %2452  ;;  %v3863_v1 = vld [vmem:[#allocation11_spill] sm:$0xff] }
 0x27e   : > { %v1141_v30 = vpop.xlane.xlu1 %1140 }
 0x27f   : > { %2466 = vpow2.f32 %v1392_v36  ;;  %v1245_v54 = vsub.f32 %v3255_v17, %v1141_v30  ;;  %v1330_v45 = vmul.f32 1.442695, %v1244_v39  ;;  %v3865_v39 = vld [vmem:[#allocation12_spill] sm:$0xff] }
 0x280   : > { %v3488_v20 = vpop.eup %2454  ;;  %v1203_v9 = vpop.xlane.xlu0 %1202  ;;  %2468 = vpow2.f32 %v1390_v52 }
 0x281   : > { %v1332_v55 = vmul.f32 1.442695, %v1245_v54  ;;  %1452 = vadd.xlane.f32.xlu1 %v3488_v20  ;;  %1510 = vadd.xlane.f32.xlu0 %v3485_v2  ;;  %v1276_v49 = vsub.f32 %v3263_v19, %v1203_v9  ;;  %v3493_v18 = vpop.eup %2456 }
 0x282   : > { %v1205_v28 = vpop.xlane.xlu1 %1204 }
 0x283   : > { %2470 = vpow2.f32 %v1332_v55  ;;  %v1277_v0 = vsub.f32 %v3266_v25, %v1205_v28  ;;  %v1394_v46 = vmul.f32 1.442695, %v1276_v49 }
 0x284   : > { %v3496_v24 = vpop.eup %2458  ;;  %v1143_v17 = vpop.xlane.xlu0 %1142  ;;  %2472 = vpow2.f32 %v1330_v45  ;;  %v3867_v45 = vld [vmem:[#allocation14_spill] sm:$0xff] }
 0x285   : > { %v1396_v29 = vmul.f32 1.442695, %v1277_v0  ;;  %1516 = vadd.xlane.f32.xlu1 %v3496_v24  ;;  %1450 = vadd.xlane.f32.xlu0 %v3493_v18  ;;  %v1246_v56 = vsub.f32 %v3274_v43, %v1143_v17  ;;  %v3501_v19 = vpop.eup %2460  ;;  %v3869_v17 = vld [vmem:[#allocation13_spill] sm:$0xff] }
 0x286   : > { %v1145_v47 = vpop.xlane.xlu1 %1144  ;;  %3862 = vst [vmem:[#allocation25_spill] sm:$0xff] %v3501_v19 }
 0x287   : > { %2474 = vpow2.f32 %v1396_v29  ;;  %v1247_v10 = vsub.f32 %v3271_v42, %v1145_v47  ;;  %v1334_v32 = vmul.f32 1.442695, %v1246_v56 }
 0x288   : > { %v3504_v33 = vpop.eup %2462  ;;  %v1207_v25 = vpop.xlane.xlu0 %1206  ;;  %2476 = vpow2.f32 %v1394_v46 }
 0x289   : > { %v1336_v48 = vmul.f32 1.442695, %v1247_v10  ;;  %1456 = vadd.xlane.f32.xlu1 %v3504_v33  ;;  %1514 = vadd.xlane.f32.xlu0 %v3501_v19  ;;  %v1278_v36 = vsub.f32 %v3863_v1, %v1207_v25  ;;  %v3509_v43 = vpop.eup %2464  ;;  %v3871_v25 = vld [vmem:[#allocation15_spill] sm:$0xff] }
 0x28a   : > { %v1209_v52 = vpop.xlane.xlu1 %1208  ;;  %3864 = vst [vmem:[#allocation11_spill] sm:$0xff] %v3509_v43 }
 0x28b   : > { %2478 = vpow2.f32 %v1336_v48  ;;  %v1279_v30 = vsub.f32 %v3865_v39, %v1209_v52  ;;  %v1398_v55 = vmul.f32 1.442695, %v1278_v36  ;;  %v3873_v36 = vld [vmem:[#allocation16_spill] sm:$0xff] }
 0x28c   : > { %v3512_v54 = vpop.eup %2466  ;;  %v1147_v42 = vpop.xlane.xlu0 %1146  ;;  %2480 = vpow2.f32 %v1334_v32 }
 0x28d   : > { %3866 = vst [vmem:[#allocation12_spill] sm:$0xff] %v3512_v54  ;;  %v1400_v9 = vmul.f32 1.442695, %v1279_v30  ;;  %1520 = vadd.xlane.f32.xlu1 %v3512_v54  ;;  %1454 = vadd.xlane.f32.xlu0 %v3509_v43  ;;  %v1248_v49 = vsub.f32 %v3867_v45, %v1147_v42  ;;  %v3517_v0 = vpop.eup %2468 }
 0x28e   : > { %v1149_v28 = vpop.xlane.xlu1 %1148  ;;  %3868 = vst [vmem:[#allocation14_spill] sm:$0xff] %v3517_v0 }
 0x28f   : > { %2482 = vpow2.f32 %v1400_v9  ;;  %v1249_v29 = vsub.f32 %v3869_v17, %v1149_v28  ;;  %v1338_v10 = vmul.f32 1.442695, %v1248_v49  ;;  %v3877_v17 = vld [vmem:[#allocation17_spill] sm:$0xff] }
 0x290   : > { %v3520_v46 = vpop.eup %2470  ;;  %v1211_v56 = vpop.xlane.xlu0 %1210  ;;  %2484 = vpow2.f32 %v1398_v55  ;;  %v3875_v55 = vld [vmem:[#allocation18_spill] sm:$0xff] }
 0x291   : > { %3870 = vst [vmem:[#allocation13_spill] sm:$0xff] %v3520_v46  ;;  %v1340_v47 = vmul.f32 1.442695, %v1249_v29  ;;  %1460 = vadd.xlane.f32.xlu1 %v3520_v46  ;;  %1518 = vadd.xlane.f32.xlu0 %v3517_v0  ;;  %v1280_v48 = vsub.f32 %v3871_v25, %v1211_v56  ;;  %v3525_v1 = vpop.eup %2472 }
 0x292   : > { %v1213_v32 = vpop.xlane.xlu1 %1212  ;;  %3872 = vst [vmem:[#allocation15_spill] sm:$0xff] %v3525_v1 }
 0x293   : > { %2486 = vpow2.f32 %v1340_v47  ;;  %v1281_v52 = vsub.f32 %v3873_v36, %v1213_v32  ;;  %v1402_v9 = vmul.f32 1.442695, %v1280_v48 }
 0x294   : > { %v3528_v39 = vpop.eup %2474  ;;  %v1151_v30 = vpop.xlane.xlu0 %1150  ;;  %2488 = vpow2.f32 %v1338_v10  ;;  %v3879_v10 = vld [vmem:[#allocation19_spill] sm:$0xff] }
 0x295   : > { %3874 = vst [vmem:[#allocation16_spill] sm:$0xff] %v3528_v39  ;;  %v1404_v42 = vmul.f32 1.442695, %v1281_v52  ;;  %1524 = vadd.xlane.f32.xlu1 %v3528_v39  ;;  %1458 = vadd.xlane.f32.xlu0 %v3525_v1  ;;  %v1250_v45 = vsub.f32 %v3875_v55, %v1151_v30  ;;  %v3533_v28 = vpop.eup %2476  ;;  %v3881_v30 = vld [vmem:[#allocation20_spill] sm:$0xff] }
 0x296   : > { %v1153_v49 = vpop.xlane.xlu1 %1152  ;;  %3876 = vst [vmem:[#allocation18_spill] sm:$0xff] %v3533_v28 }
 0x297   : > { %2490 = vpow2.f32 %v1404_v42  ;;  %v1251_v29 = vsub.f32 %v3877_v17, %v1153_v49  ;;  %v1342_v32 = vmul.f32 1.442695, %v1250_v45 }
 0x298   : > { %v3536_v56 = vpop.eup %2478  ;;  %v1215_v47 = vpop.xlane.xlu0 %1214  ;;  %2492 = vpow2.f32 %v1402_v9  ;;  %v3883_v9 = vld [vmem:[#allocation22_spill] sm:$0xff] }
 0x299   : > { %3878 = vst [vmem:[#allocation17_spill] sm:$0xff] %v3536_v56  ;;  %v1344_v25 = vmul.f32 1.442695, %v1251_v29  ;;  %1464 = vadd.xlane.f32.xlu1 %v3536_v56  ;;  %1522 = vadd.xlane.f32.xlu0 %v3533_v28  ;;  %v1282_v48 = vsub.f32 %v3879_v10, %v1215_v47  ;;  %v3541_v52 = vpop.eup %2480  ;;  %v3885_v10 = vld [vmem:[#allocation21_spill] sm:$0xff] }
 0x29a   : > { %v1217_v36 = vpop.xlane.xlu1 %1216  ;;  %3880 = vst [vmem:[#allocation19_spill] sm:$0xff] %v3541_v52 }
 0x29b   : > { %2494 = vpow2.f32 %v1344_v25  ;;  %v1283_v42 = vsub.f32 %v3881_v30, %v1217_v36  ;;  %v1406_v29 = vmul.f32 1.442695, %v1282_v48 }
 0x29c   : > { %v3544_v55 = vpop.eup %2482  ;;  %v1155_v49 = vpop.xlane.xlu0 %1154  ;;  %2496 = vpow2.f32 %v1342_v32 }
 0x29d   : > { %3882 = vst [vmem:[#allocation20_spill] sm:$0xff] %v3544_v55  ;;  %v1408_v17 = vmul.f32 1.442695, %v1283_v42  ;;  %1528 = vadd.xlane.f32.xlu1 %v3544_v55  ;;  %1462 = vadd.xlane.f32.xlu0 %v3541_v52  ;;  %v1252_v45 = vsub.f32 %v3883_v9, %v1155_v49  ;;  %v3549_v47 = vpop.eup %2484  ;;  %v3888_v49 = vld [vmem:[#allocation23_spill] sm:$0xff]  ;;  %v3889_v52 = vld [vmem:[#allocation24_spill] sm:$0xff] }
 0x29e   : > { %v1157_v28 = vpop.xlane.xlu1 %1156  ;;  %3884 = vst [vmem:[#allocation22_spill] sm:$0xff] %v3549_v47 }
 0x29f   : > { %2498 = vpow2.f32 %v1408_v17  ;;  %v1253_v25 = vsub.f32 %v3885_v10, %v1157_v28  ;;  %v1346_v42 = vmul.f32 1.442695, %v1252_v45 }
 0x2a0   : > { %v3552_v56 = vpop.eup %2486  ;;  %v1219_v36 = vpop.xlane.xlu0 %1218  ;;  %2500 = vpow2.f32 %v1406_v29 }
 0x2a1   : > { %3886 = vst [vmem:[#allocation21_spill] sm:$0xff] %v3552_v56  ;;  %v1348_v30 = vmul.f32 1.442695, %v1253_v25  ;;  %1468 = vadd.xlane.f32.xlu1 %v3552_v56  ;;  %1526 = vadd.xlane.f32.xlu0 %v3549_v47  ;;  %v3556_v48 = vpop.eup %2488  ;;  %v1284_v9 = vsub.f32 %v3888_v49, %v1219_v36 }
 0x2a2   : > { %v1221_v32 = vpop.xlane.xlu1 %1220  ;;  %3887 = vst [vmem:[#allocation26_spill] sm:$0xff] %v3556_v48 }
 0x2a3   : > { %2502 = vpow2.f32 %v1348_v30  ;;  %v1285_v17 = vsub.f32 %v3889_v52, %v1221_v32  ;;  %v1410_v29 = vmul.f32 1.442695, %v1284_v9 }
 0x2a4   : > { %v3560_v55 = vpop.eup %2490  ;;  %2504 = vpow2.f32 %v1346_v42 }
 0x2a5   : > { %3890 = vst [vmem:[#allocation23_spill] sm:$0xff] %v3560_v55  ;;  %v1412_v28 = vmul.f32 1.442695, %v1285_v17  ;;  %1532 = vadd.xlane.f32.xlu1 %v3560_v55  ;;  %1466 = vadd.xlane.f32.xlu0 %v3556_v48  ;;  %v3564_v10 = vpop.eup %2492 }
 0x2a6   : > { %3891 = vst [vmem:[#allocation24_spill] sm:$0xff] %v3564_v10 }
 0x2a7   : > { %2506 = vpow2.f32 %v1412_v28 }
 0x2a8   : > { %v3566_v45 = vpop.eup %2494  ;;  %2508 = vpow2.f32 %v1410_v29 }
 0x2a9   : > { %3892 = vst [vmem:[#allocation27_spill] sm:$0xff] %v3566_v45  ;;  %1472 = vadd.xlane.f32.xlu1 %v3566_v45  ;;  %1530 = vadd.xlane.f32.xlu0 %v3564_v10  ;;  %v3570_v25 = vpop.eup %2496 }
 0x2aa   : > { %3893 = vst [vmem:[#allocation28_spill] sm:$0xff] %v3570_v25 }
 0x2ac   : > { %v3572_v52 = vpop.eup %2498 }
 0x2ad   : > { %3894 = vst [vmem:[#allocation29_spill] sm:$0xff] %v3572_v52  ;;  %1536 = vadd.xlane.f32.xlu1 %v3572_v52  ;;  %1470 = vadd.xlane.f32.xlu0 %v3570_v25  ;;  %v3576_v36 = vpop.eup %2500 }
 0x2ae   : > { %3895 = vst [vmem:[#allocation30_spill] sm:$0xff] %v3576_v36 }
 0x2b0   : > { %v3578_v30 = vpop.eup %2502 }
 0x2b1   : > { %3896 = vst [vmem:[#allocation31_spill] sm:$0xff] %v3578_v30  ;;  %1476 = vadd.xlane.f32.xlu1 %v3578_v30  ;;  %1534 = vadd.xlane.f32.xlu0 %v3576_v36  ;;  %v3582_v42 = vpop.eup %2504 }
 0x2b2   : > { %3897 = vst [vmem:[#allocation32_spill] sm:$0xff] %v3582_v42 }
 0x2b4   : > { %v3584_v32 = vpop.eup %2506 }
 0x2b5   : > { %3898 = vst [vmem:[#allocation33_spill] sm:$0xff] %v3584_v32  ;;  %1540 = vadd.xlane.f32.xlu1 %v3584_v32  ;;  %1474 = vadd.xlane.f32.xlu0 %v3582_v42  ;;  %v3588_v49 = vpop.eup %2508 }
 0x2b6   : > { %3899 = vst [vmem:[#allocation34_spill] sm:$0xff] %v3588_v49 }
 0x2b9   : > { %1538 = vadd.xlane.f32.xlu0 %v3588_v49 }
 0x2be   : > { %v1417_v9 = vpop.xlane.xlu1 %1416 }
 0x2bf   : > { %2510 = vrcp.f32 %v1417_v9 }
 0x2c0   : > { %v1415_v17 = vpop.xlane.xlu0 %1414 }
 0x2c1   : > { %2512 = vrcp.f32 %v1415_v17 }
 0x2c2   : > { %v1481_v28 = vpop.xlane.xlu1 %1480 }
 0x2c3   : > { %2514 = vrcp.f32 %v1481_v28 }
 0x2c4   : > { %v1479_v29 = vpop.xlane.xlu0 %1478 }
 0x2c5   : > { %2516 = vrcp.f32 %v1479_v29 }
 0x2c6   : > { %v1421_v36 = vpop.xlane.xlu1 %1420 }
 0x2c7   : > { %2518 = vrcp.f32 %v1421_v36 }
 0x2ca   : > { %v1485_v30 = vpop.xlane.xlu1 %1484 }
 0x2cb   : > { %2520 = vrcp.f32 %v1485_v30 }
 0x2cc   : > { %v2511_v32 = vpop.eup %2510 }
 0x2cd   : > { %v1607_v25 = vmul.f32 %v2511_v32, %v1417_v9 }
 0x2ce   : > { %v2513_v42 = vpop.eup %2512  ;;  %v1419_v52 = vpop.xlane.xlu0 %1418 }
 0x2cf   : > { %v1671_v10 = vsub.f32 2.0, %v1607_v25  ;;  %v1606_v49 = vmul.f32 %v2513_v42, %v1415_v17  ;;  %2522 = vrcp.f32 %v1419_v52 }
 0x2d0   : > { %v2515_v45 = vpop.eup %2514 }
 0x2d1   : > { %v1735_v48 = vmul.f32 %v2511_v32, %v1671_v10  ;;  %v1670_v55 = vsub.f32 2.0, %v1606_v49  ;;  %v1639_v47 = vmul.f32 %v2515_v45, %v1481_v28 }
 0x2d2   : > { %v2517_v56 = vpop.eup %2516  ;;  %v1425_v1 = vpop.xlane.xlu1 %1424 }
 0x2d3   : > { %v1483_v39 = vpop.xlane.xlu0 %1482  ;;  %v1799_v0 = vmul.f32 %v3343_v31, %v1735_v48  ;;  %v1734_v46 = vmul.f32 %v2513_v42, %v1670_v55  ;;  %v1703_v43 = vsub.f32 2.0, %v1639_v47  ;;  %v1638_v54 = vmul.f32 %v2517_v56, %v1479_v29 }
 0x2d4   : > { %v2519_v19 = vpop.eup %2518  ;;  %2524 = vrcp.f32 %v1425_v1 }
 0x2d5   : > { %1863 = vst [vmem:[%s3593_s22 + $0x8] sm:$0xff] %v1799_v0  ;;  %v1798_v10 = vmul.f32 %v3346_v34, %v1734_v46  ;;  %v1767_v25 = vmul.f32 %v2515_v45, %v1703_v43  ;;  %v1702_v32 = vsub.f32 2.0, %v1638_v54  ;;  %v1609_v49 = vmul.f32 %v2519_v19, %v1421_v36 }
 0x2d6   : > { %2526 = vrcp.f32 %v1483_v39  ;;  %v1489_v9 = vpop.xlane.xlu1 %1488 }
 0x2d7   : > { %v1423_v31 = vpop.xlane.xlu0 %1422  ;;  %1862 = vst [vmem:[%s3593_s22] sm:$0xff] %v1798_v10  ;;  %v1831_v55 = vmul.f32 %v3351_v37, %v1767_v25  ;;  %v1766_v47 = vmul.f32 %v2517_v56, %v1702_v32  ;;  %v1673_v48 = vsub.f32 2.0, %v1609_v49  ;;  %2528 = vrcp.f32 %v1489_v9 }
 0x2d8   : > { %v2521_v42 = vpop.eup %2520  ;;  %2530 = vrcp.f32 %v1423_v31 }
 0x2d9   : > { %1895 = vst [vmem:[%s3593_s22 + $0x108] sm:$0xff] %v1831_v55  ;;  %v1830_v0 = vmul.f32 %v3354_v11, %v1766_v47  ;;  %v1737_v34 = vmul.f32 %v2519_v19, %v1673_v48  ;;  %v1641_v43 = vmul.f32 %v2521_v42, %v1485_v30 }
 0x2da   : > { %v1429_v54 = vpop.xlane.xlu1 %1428 }
 0x2db   : > { %v1487_v46 = vpop.xlane.xlu0 %1486  ;;  %1894 = vst [vmem:[%s3593_s22 + $0x100] sm:$0xff] %v1830_v0  ;;  %v1801_v45 = vmul.f32 %v3359_v44, %v1737_v34  ;;  %v1705_v36 = vsub.f32 2.0, %v1641_v43  ;;  %2532 = vrcp.f32 %v1429_v54 }
 0x2dc   : > { %v2523_v37 = vpop.eup %2522  ;;  %2534 = vrcp.f32 %v1487_v46 }
 0x2dd   : > { %1865 = vst [vmem:[%s3593_s22 + $0x18] sm:$0xff] %v1801_v45  ;;  %v1769_v56 = vmul.f32 %v2521_v42, %v1705_v36  ;;  %v1608_v17 = vmul.f32 %v2523_v37, %v1419_v52 }
 0x2de   : > { %v1493_v28 = vpop.xlane.xlu1 %1492 }
 0x2df   : > { %v1427_v29 = vpop.xlane.xlu0 %1426  ;;  %v1833_v10 = vmul.f32 %v3364_v27, %v1769_v56  ;;  %v1672_v11 = vsub.f32 2.0, %v1608_v17  ;;  %2536 = vrcp.f32 %v1493_v28 }
 0x2e0   : > { %2538 = vrcp.f32 %v1427_v29 }
 0x2e1   : > { %v2525_v19 = vpop.eup %2524  ;;  %1897 = vst [vmem:[%s3593_s22 + $0x118] sm:$0xff] %v1833_v10  ;;  %v1736_v30 = vmul.f32 %v2523_v37, %v1672_v11 }
 0x2e2   : > { %v1611_v25 = vmul.f32 %v2525_v19, %v1425_v1  ;;  %v1433_v44 = vpop.xlane.xlu1 %1432 }
 0x2e3   : > { %v1491_v32 = vpop.xlane.xlu0 %1490  ;;  %v2527_v49 = vpop.eup %2526  ;;  %v1800_v55 = vmul.f32 %v3369_v58, %v1736_v30  ;;  %2540 = vrcp.f32 %v1433_v44 }
 0x2e4   : > { %v2529_v47 = vpop.eup %2528  ;;  %v1675_v52 = vsub.f32 2.0, %v1611_v25  ;;  %v1640_v48 = vmul.f32 %v2527_v49, %v1483_v39  ;;  %2542 = vrcp.f32 %v1491_v32 }
 0x2e5   : > { %v2531_v42 = vpop.eup %2530  ;;  %1864 = vst [vmem:[%s3593_s22 + $0x10] sm:$0xff] %v1800_v55  ;;  %v1643_v27 = vmul.f32 %v2529_v47, %v1489_v9 }
 0x2e6   : > { %v1739_v0 = vmul.f32 %v2525_v19, %v1675_v52  ;;  %v1704_v34 = vsub.f32 2.0, %v1640_v48  ;;  %v1610_v43 = vmul.f32 %v2531_v42, %v1423_v31  ;;  %v1497_v45 = vpop.xlane.xlu1 %1496 }
 0x2e7   : > { %v3608_v36 = vpop.xlane.xlu0 %1430  ;;  %v1707_v1 = vsub.f32 2.0, %v1643_v27  ;;  %2544 = vrcp.f32 %v1497_v45 }
 0x2e8   : > { %v2533_v37 = vpop.eup %2532  ;;  %v1803_v58 = vmul.f32 %v3376_v6, %v1739_v0  ;;  %v1768_v56 = vmul.f32 %v2527_v49, %v1704_v34  ;;  %v1674_v17 = vsub.f32 2.0, %v1610_v43  ;;  %2546 = vrcp.f32 %v3608_v36 }
 0x2e9   : > { %v2535_v39 = vpop.eup %2534  ;;  %v1771_v10 = vmul.f32 %v2529_v47, %v1707_v1  ;;  %v1613_v9 = vmul.f32 %v2533_v37, %v1429_v54 }
 0x2ea   : > { %1867 = vst [vmem:[%s3593_s22 + $0x28] sm:$0xff] %v1803_v58  ;;  %v1832_v31 = vmul.f32 %v3373_v23, %v1768_v56  ;;  %v1738_v11 = vmul.f32 %v2531_v42, %v1674_v17  ;;  %v1642_v19 = vmul.f32 %v2535_v39, %v1487_v46  ;;  %v1437_v30 = vpop.xlane.xlu1 %1436 }
 0x2eb   : > { %v3614_v25 = vpop.xlane.xlu0 %1494  ;;  %v1835_v6 = vmul.f32 %v3384_v59, %v1771_v10  ;;  %v1677_v49 = vsub.f32 2.0, %v1613_v9  ;;  %2548 = vrcp.f32 %v1437_v30 }
 0x2ec   : > { %v2537_v55 = vpop.eup %2536  ;;  %1896 = vst [vmem:[%s3593_s22 + $0x110] sm:$0xff] %v1832_v31  ;;  %v1802_v52 = vmul.f32 %v3381_v61, %v1738_v11  ;;  %v1706_v47 = vsub.f32 2.0, %v1642_v19  ;;  %2550 = vrcp.f32 %v3614_v25 }
 0x2ed   : > { %v2539_v54 = vpop.eup %2538  ;;  %1899 = vst [vmem:[%s3593_s22 + $0x128] sm:$0xff] %v1835_v6  ;;  %v1741_v23 = vmul.f32 %v2533_v37, %v1677_v49  ;;  %v1645_v48 = vmul.f32 %v2537_v55, %v1493_v28 }
 0x2ee   : > { %1866 = vst [vmem:[%s3593_s22 + $0x20] sm:$0xff] %v1802_v52  ;;  %v1770_v46 = vmul.f32 %v2535_v39, %v1706_v47  ;;  %v1612_v42 = vmul.f32 %v2539_v54, %v1427_v29  ;;  %v1501_v27 = vpop.xlane.xlu1 %1500 }
 0x2ef   : > { %v1435_v59 = vpop.xlane.xlu0 %1434  ;;  %v1805_v0 = vmul.f32 %v3392_v40, %v1741_v23  ;;  %v1709_v34 = vsub.f32 2.0, %v1645_v48  ;;  %2552 = vrcp.f32 %v1501_v27 }
 0x2f0   : > { %v2541_v43 = vpop.eup %2540  ;;  %v1834_v61 = vmul.f32 %v3389_v62, %v1770_v46  ;;  %v1676_v1 = vsub.f32 2.0, %v1612_v42  ;;  %2554 = vrcp.f32 %v1435_v59 }
 0x2f1   : > { %v2543_v58 = vpop.eup %2542  ;;  %1869 = vst [vmem:[%s3593_s22 + $0x38] sm:$0xff] %v1805_v0  ;;  %v1773_v37 = vmul.f32 %v2537_v55, %v1709_v34  ;;  %v1615_v28 = vmul.f32 %v2541_v43, %v1433_v44 }
 0x2f2   : > { %1898 = vst [vmem:[%s3593_s22 + $0x120] sm:$0xff] %v1834_v61  ;;  %v1740_v56 = vmul.f32 %v2539_v54, %v1676_v1  ;;  %v1644_v29 = vmul.f32 %v2543_v58, %v1491_v32  ;;  %v1441_v17 = vpop.xlane.xlu1 %1440 }
 0x2f3   : > { %v1499_v39 = vpop.xlane.xlu0 %1498  ;;  %v1837_v40 = vmul.f32 %v3400_v41, %v1773_v37  ;;  %v1679_v10 = vsub.f32 2.0, %v1615_v28  ;;  %2556 = vrcp.f32 %v1441_v17 }
 0x2f4   : > { %v2545_v9 = vpop.eup %2544  ;;  %v1804_v62 = vmul.f32 %v3397_v7, %v1740_v56  ;;  %v1708_v31 = vsub.f32 2.0, %v1644_v29  ;;  %2558 = vrcp.f32 %v1499_v39 }
 0x2f5   : > { %v2547_v11 = vpop.eup %2546  ;;  %1901 = vst [vmem:[%s3593_s22 + $0x138] sm:$0xff] %v1837_v40  ;;  %v1743_v19 = vmul.f32 %v2541_v43, %v1679_v10  ;;  %v1647_v44 = vmul.f32 %v2545_v9, %v1497_v45 }
 0x2f6   : > { %1868 = vst [vmem:[%s3593_s22 + $0x30] sm:$0xff] %v1804_v62  ;;  %v1772_v6 = vmul.f32 %v2543_v58, %v1708_v31  ;;  %v1614_v32 = vmul.f32 %v2547_v11, %v3608_v36  ;;  %v1505_v49 = vpop.xlane.xlu1 %1504 }
 0x2f7   : > { %v1439_v55 = vpop.xlane.xlu0 %1438  ;;  %v1807_v41 = vmul.f32 %v3408_v16, %v1743_v19  ;;  %v1711_v52 = vsub.f32 2.0, %v1647_v44  ;;  %2560 = vrcp.f32 %v1505_v49 }
 0x2f8   : > { %v2549_v47 = vpop.eup %2548  ;;  %v1836_v7 = vmul.f32 %v3405_v3, %v1772_v6  ;;  %v1678_v54 = vsub.f32 2.0, %v1614_v32  ;;  %2562 = vrcp.f32 %v1439_v55 }
 0x2f9   : > { %v2551_v23 = vpop.eup %2550  ;;  %1871 = vst [vmem:[%s3593_s22 + $0x48] sm:$0xff] %v1807_v41  ;;  %v1775_v45 = vmul.f32 %v2545_v9, %v1711_v52  ;;  %v1617_v48 = vmul.f32 %v2549_v47, %v1437_v30 }
 0x2fa   : > { %1900 = vst [vmem:[%s3593_s22 + $0x130] sm:$0xff] %v1836_v7  ;;  %v1742_v46 = vmul.f32 %v2547_v11, %v1678_v54  ;;  %v1646_v36 = vmul.f32 %v2551_v23, %v3614_v25  ;;  %v1445_v42 = vpop.xlane.xlu1 %1444 }
 0x2fb   : > { %v1503_v0 = vpop.xlane.xlu0 %1502  ;;  %v1839_v16 = vmul.f32 %v3416_v57, %v1775_v45  ;;  %v1681_v34 = vsub.f32 2.0, %v1617_v48  ;;  %2564 = vrcp.f32 %v1445_v42 }
 0x2fc   : > { %v2553_v43 = vpop.eup %2552  ;;  %v1806_v3 = vmul.f32 %v3413_v13, %v1742_v46  ;;  %v1710_v61 = vsub.f32 2.0, %v1646_v36  ;;  %2566 = vrcp.f32 %v1503_v0 }
 0x2fd   : > { %v2555_v1 = vpop.eup %2554  ;;  %1903 = vst [vmem:[%s3593_s22 + $0x148] sm:$0xff] %v1839_v16  ;;  %v1745_v30 = vmul.f32 %v2549_v47, %v1681_v34  ;;  %v1649_v58 = vmul.f32 %v2553_v43, %v1501_v27 }
 0x2fe   : > { %1870 = vst [vmem:[%s3593_s22 + $0x40] sm:$0xff] %v1806_v3  ;;  %v1774_v37 = vmul.f32 %v2551_v23, %v1710_v61  ;;  %v1616_v25 = vmul.f32 %v2555_v1, %v1435_v59  ;;  %v1509_v28 = vpop.xlane.xlu1 %1508 }
 0x2ff   : > { %v1443_v56 = vpop.xlane.xlu0 %1442  ;;  %v1809_v57 = vmul.f32 %v3424_v53, %v1745_v30  ;;  %v1713_v29 = vsub.f32 2.0, %v1649_v58  ;;  %2568 = vrcp.f32 %v1509_v28 }
 0x300   : > { %v2557_v40 = vpop.eup %2556  ;;  %v1838_v13 = vmul.f32 %v3421_v14, %v1774_v37  ;;  %v1680_v10 = vsub.f32 2.0, %v1616_v25  ;;  %2570 = vrcp.f32 %v1443_v56 }
 0x301   : > { %v2559_v9 = vpop.eup %2558  ;;  %1873 = vst [vmem:[%s3593_s22 + $0x58] sm:$0xff] %v1809_v57  ;;  %v1777_v62 = vmul.f32 %v2553_v43, %v1713_v29  ;;  %v1619_v27 = vmul.f32 %v2557_v40, %v1441_v17 }
 0x302   : > { %1902 = vst [vmem:[%s3593_s22 + $0x140] sm:$0xff] %v1838_v13  ;;  %v1744_v31 = vmul.f32 %v2555_v1, %v1680_v10  ;;  %v1648_v59 = vmul.f32 %v2559_v9, %v1499_v39  ;;  %v1449_v11 = vpop.xlane.xlu1 %1448 }
 0x303   : > { %v1507_v19 = vpop.xlane.xlu0 %1506  ;;  %v1841_v53 = vmul.f32 %v3432_v26, %v1777_v62  ;;  %v1683_v44 = vsub.f32 2.0, %v1619_v27  ;;  %2572 = vrcp.f32 %v1449_v11 }
 0x304   : > { %v2561_v6 = vpop.eup %2560  ;;  %v1808_v14 = vmul.f32 %v3429_v21, %v1744_v31  ;;  %v1712_v32 = vsub.f32 2.0, %v1648_v59  ;;  %2574 = vrcp.f32 %v1507_v19 }
 0x305   : > { %v2563_v41 = vpop.eup %2562  ;;  %1905 = vst [vmem:[%s3593_s22 + $0x158] sm:$0xff] %v1841_v53  ;;  %v1747_v52 = vmul.f32 %v2557_v40, %v1683_v44  ;;  %v1651_v17 = vmul.f32 %v2561_v6, %v1505_v49 }
 0x306   : > { %1872 = vst [vmem:[%s3593_s22 + $0x50] sm:$0xff] %v1808_v14  ;;  %v1776_v47 = vmul.f32 %v2559_v9, %v1712_v32  ;;  %v1618_v39 = vmul.f32 %v2563_v41, %v1439_v55  ;;  %v1513_v7 = vpop.xlane.xlu1 %1512 }
 0x307   : > { %v1447_v54 = vpop.xlane.xlu0 %1446  ;;  %v1811_v26 = vmul.f32 %v3440_v60, %v1747_v52  ;;  %v1715_v23 = vsub.f32 2.0, %v1651_v17  ;;  %2576 = vrcp.f32 %v1513_v7 }
 0x308   : > { %v2565_v45 = vpop.eup %2564  ;;  %v1840_v21 = vmul.f32 %v3437_v22, %v1776_v47  ;;  %v1682_v48 = vsub.f32 2.0, %v1618_v39  ;;  %2578 = vrcp.f32 %v1447_v54 }
 0x309   : > { %v2567_v46 = vpop.eup %2566  ;;  %1875 = vst [vmem:[%s3593_s22 + $0x68] sm:$0xff] %v1811_v26  ;;  %v1779_v36 = vmul.f32 %v2561_v6, %v1715_v23  ;;  %v1621_v49 = vmul.f32 %v2565_v45, %v1445_v42 }
 0x30a   : > { %1904 = vst [vmem:[%s3593_s22 + $0x150] sm:$0xff] %v1840_v21  ;;  %v1746_v16 = vmul.f32 %v2563_v41, %v1682_v48  ;;  %v1650_v55 = vmul.f32 %v2567_v46, %v1503_v0  ;;  %v1453_v34 = vpop.xlane.xlu1 %1452 }
 0x30b   : > { %v1511_v43 = vpop.xlane.xlu0 %1510  ;;  %v1843_v60 = vmul.f32 %v3448_v63, %v1779_v36  ;;  %v1685_v3 = vsub.f32 2.0, %v1621_v49  ;;  %2580 = vrcp.f32 %v1453_v34 }
 0x30c   : > { %v2569_v61 = vpop.eup %2568  ;;  %v1810_v22 = vmul.f32 %v3445_v35, %v1746_v16  ;;  %v1714_v1 = vsub.f32 2.0, %v1650_v55  ;;  %2582 = vrcp.f32 %v1511_v43 }
 0x30d   : > { %v2571_v30 = vpop.eup %2570  ;;  %1907 = vst [vmem:[%s3593_s22 + $0x168] sm:$0xff] %v1843_v60  ;;  %v1749_v58 = vmul.f32 %v2565_v45, %v1685_v3  ;;  %v1653_v42 = vmul.f32 %v2569_v61, %v1509_v28 }
 0x30e   : > { %1874 = vst [vmem:[%s3593_s22 + $0x60] sm:$0xff] %v1810_v22  ;;  %v1778_v37 = vmul.f32 %v2567_v46, %v1714_v1  ;;  %v1620_v0 = vmul.f32 %v2571_v30, %v1443_v56  ;;  %v1517_v25 = vpop.xlane.xlu1 %1516 }
 0x30f   : > { %v1451_v57 = vpop.xlane.xlu0 %1450  ;;  %v1813_v63 = vmul.f32 %v3456_v5, %v1749_v58  ;;  %v1717_v29 = vsub.f32 2.0, %v1653_v42  ;;  %2584 = vrcp.f32 %v1517_v25 }
 0x310   : > { %v2573_v40 = vpop.eup %2572  ;;  %v1842_v35 = vmul.f32 %v3453_v38, %v1778_v37  ;;  %v1684_v13 = vsub.f32 2.0, %v1620_v0  ;;  %2586 = vrcp.f32 %v1451_v57 }
 0x311   : > { %v2575_v10 = vpop.eup %2574  ;;  %1877 = vst [vmem:[%s3593_s22 + $0x78] sm:$0xff] %v1813_v63  ;;  %v1781_v9 = vmul.f32 %v2569_v61, %v1717_v29  ;;  %v1623_v28 = vmul.f32 %v2573_v40, %v1449_v11 }
 0x312   : > { %1906 = vst [vmem:[%s3593_s22 + $0x160] sm:$0xff] %v1842_v35  ;;  %v1748_v62 = vmul.f32 %v2571_v30, %v1684_v13  ;;  %v1652_v56 = vmul.f32 %v2575_v10, %v1507_v19  ;;  %v1457_v27 = vpop.xlane.xlu1 %1456 }
 0x313   : > { %v1515_v31 = vpop.xlane.xlu0 %1514  ;;  %v1845_v5 = vmul.f32 %v3464_v8, %v1781_v9  ;;  %v1687_v59 = vsub.f32 2.0, %v1623_v28  ;;  %2588 = vrcp.f32 %v1457_v27 }
 0x314   : > { %v2577_v53 = vpop.eup %2576  ;;  %v1812_v38 = vmul.f32 %v3461_v50, %v1748_v62  ;;  %v1716_v44 = vsub.f32 2.0, %v1652_v56  ;;  %2590 = vrcp.f32 %v1515_v31 }
 0x315   : > { %v2579_v6 = vpop.eup %2578  ;;  %1909 = vst [vmem:[%s3593_s22 + $0x178] sm:$0xff] %v1845_v5  ;;  %v1751_v14 = vmul.f32 %v2573_v40, %v1687_v59  ;;  %v1655_v11 = vmul.f32 %v2577_v53, %v1513_v7  ;;  %v3900_v59 = vld [vmem:[#allocation25_spill] sm:$0xff] }
 0x316   : > { %1876 = vst [vmem:[%s3593_s22 + $0x70] sm:$0xff] %v1812_v38  ;;  %v1780_v32 = vmul.f32 %v2575_v10, %v1716_v44  ;;  %v1622_v19 = vmul.f32 %v2579_v6, %v1447_v54  ;;  %v1521_v41 = vpop.xlane.xlu1 %1520 }
 0x317   : > { %v1455_v52 = vpop.xlane.xlu0 %1454  ;;  %v1815_v8 = vmul.f32 %v3472_v12, %v1751_v14  ;;  %v1719_v17 = vsub.f32 2.0, %v1655_v11  ;;  %2592 = vrcp.f32 %v1521_v41 }
 0x318   : > { %v2581_v47 = vpop.eup %2580  ;;  %v1844_v50 = vmul.f32 %v3469_v51, %v1780_v32  ;;  %v1686_v39 = vsub.f32 2.0, %v1622_v19  ;;  %2594 = vrcp.f32 %v1455_v52 }
 0x319   : > { %v2583_v26 = vpop.eup %2582  ;;  %1879 = vst [vmem:[%s3593_s22 + $0x88] sm:$0xff] %v1815_v8  ;;  %v1783_v23 = vmul.f32 %v2577_v53, %v1719_v17  ;;  %v1625_v7 = vmul.f32 %v2581_v47, %v1453_v34  ;;  %v3902_v17 = vld [vmem:[#allocation11_spill] sm:$0xff] }
 0x31a   : > { %1908 = vst [vmem:[%s3593_s22 + $0x170] sm:$0xff] %v1844_v50  ;;  %v1750_v45 = vmul.f32 %v2579_v6, %v1686_v39  ;;  %v1654_v54 = vmul.f32 %v2583_v26, %v1511_v43  ;;  %v1461_v21 = vpop.xlane.xlu1 %1460 }
 0x31b   : > { %v1519_v48 = vpop.xlane.xlu0 %1518  ;;  %v1847_v12 = vmul.f32 %v3480_v15, %v1783_v23  ;;  %v1689_v46 = vsub.f32 2.0, %v1625_v7  ;;  %2596 = vrcp.f32 %v1461_v21 }
 0x31c   : > { %v2585_v36 = vpop.eup %2584  ;;  %v1814_v51 = vmul.f32 %v3477_v4, %v1750_v45  ;;  %v1718_v49 = vsub.f32 2.0, %v1654_v54  ;;  %2598 = vrcp.f32 %v1519_v48 }
 0x31d   : > { %v2587_v16 = vpop.eup %2586  ;;  %1911 = vst [vmem:[%s3593_s22 + $0x188] sm:$0xff] %v1847_v12  ;;  %v1753_v55 = vmul.f32 %v2581_v47, %v1689_v46  ;;  %v1657_v34 = vmul.f32 %v2585_v36, %v1517_v25 }
 0x31e   : > { %1878 = vst [vmem:[%s3593_s22 + $0x80] sm:$0xff] %v1814_v51  ;;  %v1782_v60 = vmul.f32 %v2583_v26, %v1718_v49  ;;  %v1624_v43 = vmul.f32 %v2587_v16, %v1451_v57  ;;  %v1525_v3 = vpop.xlane.xlu1 %1524  ;;  %v3904_v51 = vld [vmem:[#allocation14_spill] sm:$0xff] }
 0x31f   : > { %v1459_v61 = vpop.xlane.xlu0 %1458  ;;  %v1817_v15 = vmul.f32 %v3488_v20, %v1753_v55  ;;  %v1721_v22 = vsub.f32 2.0, %v1657_v34  ;;  %2600 = vrcp.f32 %v1525_v3 }
 0x320   : > { %v2589_v1 = vpop.eup %2588  ;;  %v1846_v4 = vmul.f32 %v3485_v2, %v1782_v60  ;;  %v1688_v30 = vsub.f32 2.0, %v1624_v43  ;;  %2602 = vrcp.f32 %v1459_v61 }
 0x321   : > { %v2591_v58 = vpop.eup %2590  ;;  %1881 = vst [vmem:[%s3593_s22 + $0x98] sm:$0xff] %v1817_v15  ;;  %v1785_v42 = vmul.f32 %v2585_v36, %v1721_v22  ;;  %v1627_v37 = vmul.f32 %v2589_v1, %v1457_v27  ;;  %v3905_v22 = vld [vmem:[#allocation16_spill] sm:$0xff] }
 0x322   : > { %1910 = vst [vmem:[%s3593_s22 + $0x180] sm:$0xff] %v1846_v4  ;;  %v1752_v0 = vmul.f32 %v2587_v16, %v1688_v30  ;;  %v1656_v25 = vmul.f32 %v2591_v58, %v1515_v31  ;;  %v1465_v57 = vpop.xlane.xlu1 %1464 }
 0x323   : > { %v1523_v63 = vpop.xlane.xlu0 %1522  ;;  %v1849_v20 = vmul.f32 %v3496_v24, %v1785_v42  ;;  %v1691_v29 = vsub.f32 2.0, %v1627_v37  ;;  %2604 = vrcp.f32 %v1465_v57 }
 0x324   : > { %v2593_v40 = vpop.eup %2592  ;;  %v1816_v2 = vmul.f32 %v3493_v18, %v1752_v0  ;;  %v1720_v35 = vsub.f32 2.0, %v1656_v25  ;;  %2606 = vrcp.f32 %v1523_v63 }
 0x325   : > { %v2595_v13 = vpop.eup %2594  ;;  %1913 = vst [vmem:[%s3593_s22 + $0x198] sm:$0xff] %v1849_v20  ;;  %v1755_v10 = vmul.f32 %v2589_v1, %v1691_v29  ;;  %v1659_v9 = vmul.f32 %v2593_v40, %v1521_v41  ;;  %v3901_v41 = vld [vmem:[#allocation12_spill] sm:$0xff] }
 0x326   : > { %1880 = vst [vmem:[%s3593_s22 + $0x90] sm:$0xff] %v1816_v2  ;;  %v1784_v28 = vmul.f32 %v2591_v58, %v1720_v35  ;;  %v1626_v62 = vmul.f32 %v2595_v13, %v1455_v52  ;;  %v1529_v56 = vpop.xlane.xlu1 %1528  ;;  %v3906_v58 = vld [vmem:[#allocation15_spill] sm:$0xff]  ;;  %v3907_v2 = vld [vmem:[#allocation17_spill] sm:$0xff] }
 0x327   : > { %v1463_v27 = vpop.xlane.xlu0 %1462  ;;  %v1819_v24 = vmul.f32 %v3504_v33, %v1755_v10  ;;  %v1723_v31 = vsub.f32 2.0, %v1659_v9  ;;  %2608 = vrcp.f32 %v1529_v56  ;;  %v3908_v9 = vld [vmem:[#allocation18_spill] sm:$0xff] }
 0x328   : > { %v2597_v5 = vpop.eup %2596  ;;  %v1848_v18 = vmul.f32 %v3900_v59, %v1784_v28  ;;  %v1690_v53 = vsub.f32 2.0, %v1626_v62  ;;  %2610 = vrcp.f32 %v1463_v27 }
 0x329   : > { %v2599_v38 = vpop.eup %2598  ;;  %1883 = vst [vmem:[%s3593_s22 + $0xa8] sm:$0xff] %v1819_v24  ;;  %v1787_v44 = vmul.f32 %v2593_v40, %v1723_v31  ;;  %v1629_v6 = vmul.f32 %v2597_v5, %v1461_v21 }
 0x32a   : > { %1912 = vst [vmem:[%s3593_s22 + $0x190] sm:$0xff] %v1848_v18  ;;  %v1754_v14 = vmul.f32 %v2595_v13, %v1690_v53  ;;  %v1658_v11 = vmul.f32 %v2599_v38, %v1519_v48  ;;  %v1469_v32 = vpop.xlane.xlu1 %1468  ;;  %v3903_v48 = vld [vmem:[#allocation13_spill] sm:$0xff]  ;;  %v3909_v53 = vld [vmem:[#allocation20_spill] sm:$0xff] }
 0x32b   : > { %v1527_v19 = vpop.xlane.xlu0 %1526  ;;  %v1851_v33 = vmul.f32 %v3901_v41, %v1787_v44  ;;  %v1693_v52 = vsub.f32 2.0, %v1629_v6  ;;  %2612 = vrcp.f32 %v1469_v32 }
 0x32c   : > { %v2601_v8 = vpop.eup %2600  ;;  %v1818_v47 = vmul.f32 %v3902_v17, %v1754_v14  ;;  %v1722_v50 = vsub.f32 2.0, %v1658_v11  ;;  %2614 = vrcp.f32 %v1527_v19  ;;  %v3910_v14 = vld [vmem:[#allocation19_spill] sm:$0xff] }
 0x32d   : > { %v2603_v39 = vpop.eup %2602  ;;  %1915 = vst [vmem:[%s3593_s22 + $0x1a8] sm:$0xff] %v1851_v33  ;;  %v1757_v26 = vmul.f32 %v2597_v5, %v1693_v52  ;;  %v1661_v23 = vmul.f32 %v2601_v8, %v1525_v3 }
 0x32e   : > { %1882 = vst [vmem:[%s3593_s22 + $0xa0] sm:$0xff] %v1818_v47  ;;  %v1786_v7 = vmul.f32 %v2599_v38, %v1722_v50  ;;  %v1628_v45 = vmul.f32 %v2603_v39, %v1459_v61  ;;  %v1533_v54 = vpop.xlane.xlu1 %1532  ;;  %v3911_v50 = vld [vmem:[#allocation21_spill] sm:$0xff] }
 0x32f   : > { %v1467_v21 = vpop.xlane.xlu0 %1466  ;;  %v1821_v12 = vmul.f32 %v3903_v48, %v1757_v26  ;;  %v1725_v46 = vsub.f32 2.0, %v1661_v23  ;;  %2616 = vrcp.f32 %v1533_v54 }
 0x330   : > { %v2605_v36 = vpop.eup %2604  ;;  %v1850_v49 = vmul.f32 %v3904_v51, %v1786_v7  ;;  %v1692_v16 = vsub.f32 2.0, %v1628_v45  ;;  %2618 = vrcp.f32 %v1467_v21  ;;  %v3912_v7 = vld [vmem:[#allocation22_spill] sm:$0xff] }
 0x331   : > { %v2607_v55 = vpop.eup %2606  ;;  %1885 = vst [vmem:[%s3593_s22 + $0xb8] sm:$0xff] %v1821_v12  ;;  %v1789_v34 = vmul.f32 %v2601_v8, %v1725_v46  ;;  %v1631_v60 = vmul.f32 %v2605_v36, %v1465_v57 }
 0x332   : > { %1914 = vst [vmem:[%s3593_s22 + $0x1a0] sm:$0xff] %v1850_v49  ;;  %v1756_v43 = vmul.f32 %v2603_v39, %v1692_v16  ;;  %v1660_v3 = vmul.f32 %v2607_v55, %v1523_v63  ;;  %v1473_v61 = vpop.xlane.xlu1 %1472  ;;  %v3913_v49 = vld [vmem:[#allocation23_spill] sm:$0xff] }
 0x333   : > { %v1531_v15 = vpop.xlane.xlu0 %1530  ;;  %v1853_v1 = vmul.f32 %v3905_v22, %v1789_v34  ;;  %v1695_v4 = vsub.f32 2.0, %v1631_v60  ;;  %2620 = vrcp.f32 %v1473_v61  ;;  %v3914_v60 = vld [vmem:[#allocation26_spill] sm:$0xff] }
 0x334   : > { %v2609_v30 = vpop.eup %2608  ;;  %v1820_v42 = vmul.f32 %v3906_v58, %v1756_v43  ;;  %v1724_v37 = vsub.f32 2.0, %v1660_v3  ;;  %2622 = vrcp.f32 %v1531_v15  ;;  %v3915_v58 = vld [vmem:[#allocation27_spill] sm:$0xff] }
 0x335   : > { %v2611_v0 = vpop.eup %2610  ;;  %1917 = vst [vmem:[%s3593_s22 + $0x1b8] sm:$0xff] %v1853_v1  ;;  %v1759_v25 = vmul.f32 %v2605_v36, %v1695_v4  ;;  %v1663_v57 = vmul.f32 %v2609_v30, %v1529_v56 }
 0x336   : > { %1884 = vst [vmem:[%s3593_s22 + $0xb0] sm:$0xff] %v1820_v42  ;;  %v1788_v20 = vmul.f32 %v2607_v55, %v1724_v37  ;;  %v1630_v63 = vmul.f32 %v2611_v0, %v1463_v27  ;;  %v1537_v29 = vpop.xlane.xlu1 %1536 }
 0x337   : > { %v1471_v40 = vpop.xlane.xlu0 %1470  ;;  %v1823_v35 = vmul.f32 %v3907_v2, %v1759_v25  ;;  %v1727_v13 = vsub.f32 2.0, %v1663_v57  ;;  %2624 = vrcp.f32 %v1537_v29 }
 0x338   : > { %v2613_v10 = vpop.eup %2612  ;;  %v1852_v28 = vmul.f32 %v3908_v9, %v1788_v20  ;;  %v1694_v62 = vsub.f32 2.0, %v1630_v63  ;;  %2626 = vrcp.f32 %v1471_v40 }
 0x339   : > { %v2615_v24 = vpop.eup %2614  ;;  %1887 = vst [vmem:[%s3593_s22 + $0xc8] sm:$0xff] %v1823_v35  ;;  %v1791_v31 = vmul.f32 %v2609_v30, %v1727_v13  ;;  %v1633_v56 = vmul.f32 %v2613_v10, %v1469_v32 }
 0x33a   : > { %1916 = vst [vmem:[%s3593_s22 + $0x1b0] sm:$0xff] %v1852_v28  ;;  %v1758_v5 = vmul.f32 %v2611_v0, %v1694_v62  ;;  %v1662_v27 = vmul.f32 %v2615_v24, %v1527_v19  ;;  %v1477_v59 = vpop.xlane.xlu1 %1476  ;;  %v3916_v0 = vld [vmem:[#allocation24_spill] sm:$0xff] }
 0x33b   : > { %v1535_v18 = vpop.xlane.xlu0 %1534  ;;  %v1855_v38 = vmul.f32 %v3909_v53, %v1791_v31  ;;  %v1697_v44 = vsub.f32 2.0, %v1633_v56  ;;  %2628 = vrcp.f32 %v1477_v59  ;;  %v3918_v28 = vld [vmem:[#allocation28_spill] sm:$0xff]  ;;  %v3919_v53 = vld [vmem:[#allocation31_spill] sm:$0xff] }
 0x33c   : > { %v2617_v6 = vpop.eup %2616  ;;  %v1822_v11 = vmul.f32 %v3910_v14, %v1758_v5  ;;  %v1726_v41 = vsub.f32 2.0, %v1662_v27  ;;  %2630 = vrcp.f32 %v1535_v18 }
 0x33d   : > { %v2619_v33 = vpop.eup %2618  ;;  %1919 = vst [vmem:[%s3593_s22 + $0x1c8] sm:$0xff] %v1855_v38  ;;  %v1761_v52 = vmul.f32 %v2613_v10, %v1697_v44  ;;  %v1665_v32 = vmul.f32 %v2617_v6, %v1533_v54 }
 0x33e   : > { %1886 = vst [vmem:[%s3593_s22 + $0xc0] sm:$0xff] %v1822_v11  ;;  %v1790_v8 = vmul.f32 %v2615_v24, %v1726_v41  ;;  %v1632_v19 = vmul.f32 %v2619_v33, %v1467_v21  ;;  %v1541_v17 = vpop.xlane.xlu1 %1540 }
 0x33f   : > { %v1475_v47 = vpop.xlane.xlu0 %1474  ;;  %v1825_v39 = vmul.f32 %v3911_v50, %v1761_v52  ;;  %v1729_v26 = vsub.f32 2.0, %v1665_v32  ;;  %2632 = vrcp.f32 %v1541_v17  ;;  %v3921_v32 = vld [vmem:[#allocation33_spill] sm:$0xff] }
 0x340   : > { %v2621_v23 = vpop.eup %2620  ;;  %v1854_v45 = vmul.f32 %v3912_v7, %v1790_v8  ;;  %v1696_v48 = vsub.f32 2.0, %v1632_v19  ;;  %2634 = vrcp.f32 %v1475_v47 }
 0x341   : > { %v2623_v12 = vpop.eup %2622  ;;  %1889 = vst [vmem:[%s3593_s22 + $0xd8] sm:$0xff] %v1825_v39  ;;  %v1793_v46 = vmul.f32 %v2617_v6, %v1729_v26  ;;  %v1635_v54 = vmul.f32 %v2621_v23, %v1473_v61  ;;  %v3920_v6 = vld [vmem:[#allocation30_spill] sm:$0xff] }
 0x342   : > { %1918 = vst [vmem:[%s3593_s22 + $0x1c0] sm:$0xff] %v1854_v45  ;;  %v1760_v36 = vmul.f32 %v2619_v33, %v1696_v48  ;;  %v1664_v21 = vmul.f32 %v2623_v12, %v1531_v15  ;;  %v3923_v39 = vld [vmem:[#allocation34_spill] sm:$0xff] }
 0x343   : > { %v1539_v51 = vpop.xlane.xlu0 %1538  ;;  %v1857_v16 = vmul.f32 %v3913_v49, %v1793_v46  ;;  %v1699_v55 = vsub.f32 2.0, %v1635_v54 }
 0x344   : > { %2636 = vrcp.f32 %v1539_v51  ;;  %v2625_v34 = vpop.eup %2624  ;;  %v1824_v43 = vmul.f32 %v3914_v60, %v1760_v36  ;;  %v1728_v3 = vsub.f32 2.0, %v1664_v21 }
 0x345   : > { %v2627_v22 = vpop.eup %2626  ;;  %1921 = vst [vmem:[%s3593_s22 + $0x1d8] sm:$0xff] %v1857_v16  ;;  %v1763_v1 = vmul.f32 %v2621_v23, %v1699_v55  ;;  %v1667_v4 = vmul.f32 %v2625_v34, %v1537_v29  ;;  %v3917_v29 = vld [vmem:[#allocation29_spill] sm:$0xff] }
 0x346   : > { %1888 = vst [vmem:[%s3593_s22 + $0xd0] sm:$0xff] %v1824_v43  ;;  %v1792_v61 = vmul.f32 %v2623_v12, %v1728_v3  ;;  %v1634_v30 = vmul.f32 %v2627_v22, %v1471_v40 }
 0x347   : > { %v1827_v15 = vmul.f32 %v3915_v58, %v1763_v1  ;;  %v1731_v42 = vsub.f32 2.0, %v1667_v4 }
 0x348   : > { %v2629_v37 = vpop.eup %2628  ;;  %v1856_v25 = vmul.f32 %v3916_v0, %v1792_v61  ;;  %v1698_v57 = vsub.f32 2.0, %v1634_v30 }
 0x349   : > { %v2631_v20 = vpop.eup %2630  ;;  %1891 = vst [vmem:[%s3593_s22 + $0xe8] sm:$0xff] %v1827_v15  ;;  %v1795_v63 = vmul.f32 %v2625_v34, %v1731_v42  ;;  %v1637_v2 = vmul.f32 %v2629_v37, %v1477_v59 }
 0x34a   : > { %1920 = vst [vmem:[%s3593_s22 + $0x1d0] sm:$0xff] %v1856_v25  ;;  %v1762_v35 = vmul.f32 %v2627_v22, %v1698_v57  ;;  %v1666_v13 = vmul.f32 %v2631_v20, %v1535_v18 }
 0x34b   : > { %v1859_v10 = vmul.f32 %v3917_v29, %v1795_v63  ;;  %v1701_v9 = vsub.f32 2.0, %v1637_v2 }
 0x34c   : > { %v2633_v40 = vpop.eup %2632  ;;  %v1826_v62 = vmul.f32 %v3918_v28, %v1762_v35  ;;  %v1730_v24 = vsub.f32 2.0, %v1666_v13 }
 0x34d   : > { %v2635_v31 = vpop.eup %2634  ;;  %1923 = vst [vmem:[%s3593_s22 + $0x1e8] sm:$0xff] %v1859_v10  ;;  %v1765_v56 = vmul.f32 %v2629_v37, %v1701_v9  ;;  %v1669_v5 = vmul.f32 %v2633_v40, %v1541_v17  ;;  %v3922_v17 = vld [vmem:[#allocation32_spill] sm:$0xff] }
 0x34e   : > { %1890 = vst [vmem:[%s3593_s22 + $0xe0] sm:$0xff] %v1826_v62  ;;  %v1794_v27 = vmul.f32 %v2631_v20, %v1730_v24  ;;  %v1636_v59 = vmul.f32 %v2635_v31, %v1475_v47 }
 0x34f   : > { %v1829_v18 = vmul.f32 %v3919_v53, %v1765_v56  ;;  %v1733_v38 = vsub.f32 2.0, %v1669_v5 }
 0x350   : > { %v1858_v14 = vmul.f32 %v3920_v6, %v1794_v27  ;;  %v1700_v11 = vsub.f32 2.0, %v1636_v59 }
 0x351   : > { %v2637_v44 = vpop.eup %2636  ;;  %1893 = vst [vmem:[%s3593_s22 + $0xf8] sm:$0xff] %v1829_v18  ;;  %v1797_v41 = vmul.f32 %v2633_v40, %v1733_v38 }
 0x352   : > { %v1668_v33 = vmul.f32 %v2637_v44, %v1539_v51  ;;  %1922 = vst [vmem:[%s3593_s22 + $0x1e0] sm:$0xff] %v1858_v14  ;;  %v1764_v52 = vmul.f32 %v2635_v31, %v1700_v11 }
 0x353   : > { %v1861_v8 = vmul.f32 %v3921_v32, %v1797_v41 }
 0x354   : > { %v1732_v19 = vsub.f32 2.0, %v1668_v33  ;;  %v1828_v47 = vmul.f32 %v3922_v17, %v1764_v52 }
 0x355   : > { %1925 = vst [vmem:[%s3593_s22 + $0x1f8] sm:$0xff] %v1861_v8 }
 0x356   : > { %v1796_v50 = vmul.f32 %v2637_v44, %v1732_v19  ;;  %1892 = vst [vmem:[%s3593_s22 + $0xf0] sm:$0xff] %v1828_v47  ;;  %1933 = sbr.rel (!%p3924_p8) target bundleno = 886 (0x376), region = 44 }
 0x358   : > { %v1860_v26 = vmul.f32 %v3923_v39, %v1796_v50 }
 0x35a   : > { %1924 = vst [vmem:[%s3593_s22 + $0x1f0] sm:$0xff] %v1860_v26 }
 0x35b   : > { %s3932_s28 = smov (!%p1936_p3, %s1935_s28), 64 }
 0x35c   : > { %s3734_s29 = sshll.u32 %s3932_s28, 7 }
 0x35d   : > { %s1940_s30 = ssub.s32 8192, %s3734_s29 }
 0x35e   : > { %1941 = vsyncadd %s1927_s23, %s1940_s30  ;;  %p2108_p11 = scmp.ne.s32.totalorder %s3734_s29, 0  ;;  %s2115_s6 = sshll.u32 %s2810_s16, 13 }
 0x35f   : > { %s3744_s7 = scalar_lea.hbm %s3795_s3, %s2115_s6  ;;  %s1946_s9 = sshll.u32 %s3593_s22, 4  ;;  %s3747_s9 = int_to_ptr.vmem [resolvable:$true] %s1946_s9 }
 0x360   : > { %s2692_s10 = scalar_lea.vmem %s3747_s9, %s3734_s29  ;;  %s2766_s21 = smov [#allocation7]  }
 0x361   : > { %p2693_p7 = scmp.ne.s32.totalorder %s3747_s9, %s2692_s10  ;;  %s2696_s26 = sshll.u32 %s2766_s21, 4  ;;  %s2697_s26 = int_to_ptr.vmem [resolvable:$false] %s2696_s26 }
 0x362   : > { %s2698_s16 = scalar_lea.vmem %s2697_s26, 16384  ;;  %p2699_p13 = scmp.lt.s32.totalorder %s3747_s9, %s2697_s26 }
 0x363   : > { %p2694_p10 = pnand %p2693_p7, %p2108_p11  ;;  %p2700_p0 = scmp.lt.s32.totalorder %s2698_s16, %s2692_s10 }
 0x365   : > { %p2695_p2 = pneg %p2694_p10  ;;  %p2701_p5 = por %p2700_p0, %p2699_p13 }
 0x367   : > { %p2702_p9 = pnand %p2701_p5, %p2695_p2 }
 0x369   : > { %2705 = shalt.err (!%p2702_p9)
}
 0x36a   : > { %s2706_s27 = scalar_lea.hbm %s3744_s7, %s3734_s29  ;;  %s2710_s17 = scalar_lea.hbm %s3795_s3, 16000 }
 0x36b   : > { %p2707_p12 = scmp.ne.s32.totalorder %s3744_s7, %s2706_s27  ;;  %p2711_p6 = scmp.lt.s32.totalorder %s3744_s7, %s3795_s3 }
 0x36c   : > { %p2712_p8 = scmp.lt.s32.totalorder %s2710_s17, %s2706_s27 }
 0x36d   : > { %p2708_p1 = pnand %p2707_p12, %p2108_p11 }
 0x36e   : > { %p2713_p3 = por %p2712_p8, %p2711_p6 }
 0x36f   : > { %p2709_p4 = pneg %p2708_p1 }
 0x371   : > { %p2714_p7 = pnand %p2713_p3, %p2709_p4 }
 0x373   : > { %2717 = shalt.err (!%p2714_p7)
}
 0x374   : > { %s2767_s28 = smov 128   ;;  %s2768_s30 = smov 8  }
 0x375   : > { %1952 = dma.vmem_to_hbm [thread:$0]  (%p2108_p11), %s3747_s9, %s3734_s29, %s3744_s7, %s1927_s23, %s2767_s28, %s2767_s28, %s2768_s30  }
 0x376 PF: > { %s1961_s6 = sand.u32 1, %s2748_s12   ;;  %p3925_p10 = scmp.ne.s32.totalorder %s3838_s19, 0 }
 0x377   : > { %p3926_p2 = scmp.ge.s32.totalorder %s2760_s15, 2  ;;  %s1962_s4 = scalar_lea.sflag [#allocation4], %s1961_s6 }
 0x379   : > { %p2337_p13 = pnand %p3926_p2, %p3925_p10 }
 0x37b   : > { %p2338_p0 = pneg %p2337_p13 }
 0x37d   : > { %2743 = dma.done.wait (%p2338_p0), %s1962_s4, 8192  }
 0x37e   : > { %2745 = vsyncadd (%p2338_p0), %s1962_s4, 4294959104  ;;  %p17_p5 = scmp.ge.s32.totalorder %s2843_s24, 4   ;;  %s3927_s12 = smov %s2752_s13 }
 0x37f   : > { %s3928_s13 = smov %s2756_s14  ;;  %s3929_s14 = smov %s2860_s5 }
 0x380   : > { %s3930_s15 = smov %s2843_s24  ;;  %19 = sbr.rel (!%p17_p5) target bundleno = 6 (0x6), region = 81 }
 0x385   :  { %1967 = vsyncpa [#allocation3], 1 }
 0x386   :  { %1969 = vsyncpa [#allocation3 + $0x1], 1 }
 0x387   :  { %1970 = vsyncpa [#allocation6], 1 }
 0x388   :  { %1971 = vsyncpa [#allocation4], 1 }
 0x389   :  { %1973 = vsyncpa [#allocation4 + $0x1], 1 }

</bundles_post_ra>
